<compile_context>
chip_gen: v7x
topology: tpu7x:2x2x1
jax: 0.10.0
libtpu: 0.0.40
codegen_flags: <defaults>
</compile_context>

<pallas_src>
import functools

import numpy as np

import jax
import jax.numpy as jnp
from jax import lax
from jax.experimental import pallas as pl
from jax.experimental.pallas import tpu as pltpu


# --------------------------------------------------------------------------
# Fused kernel: conv3x3 -> BN -> ReLU -> conv3x3 -> BN -> ReLU  (one batch elem)
# --------------------------------------------------------------------------
def _conv_block_kernel(x_ref, w1_ref, s1_ref, t1_ref, w2_ref, s2_ref, t2_ref,
                       o_ref, xbuf_ref, ybuf_ref, *, H, W, Cin, Cout):
    f32 = jnp.float32
    bf16 = jnp.bfloat16

    # ---- zero the 1-pixel halo of both padded staging buffers ----------------
    # Done every grid step: scratch is uninitialised and per-core, and with
    # dimension_semantics=("parallel",) a core may never execute program_id==0.
    # The interiors are fully overwritten below, so only the halo is touched.
    xbuf_ref[0:1, :, :] = jnp.zeros((1, W + 2, Cin), f32)
    xbuf_ref[H + 1:H + 2, :, :] = jnp.zeros((1, W + 2, Cin), f32)
    xbuf_ref[:, 0:1, :] = jnp.zeros((H + 2, 1, Cin), f32)
    xbuf_ref[:, W + 1:W + 2, :] = jnp.zeros((H + 2, 1, Cin), f32)

    ybuf_ref[0:1, :, :] = jnp.zeros((1, W + 2, Cout), f32)
    ybuf_ref[H + 1:H + 2, :, :] = jnp.zeros((1, W + 2, Cout), f32)
    ybuf_ref[:, 0:1, :] = jnp.zeros((H + 2, 1, Cout), f32)
    ybuf_ref[:, W + 1:W + 2, :] = jnp.zeros((H + 2, 1, Cout), f32)

    # ---- conv1: stage input ('same' zero padding in VMEM), 9 per-tap GEMMs ----
    xbuf_ref[1:H + 1, 1:W + 1, :] = x_ref[0]
    acc = jnp.zeros((H * W, Cout), f32)
    for ki in range(3):
        for kj in range(3):
            win = xbuf_ref[ki:ki + H, kj:kj + W, :].reshape(H * W, Cin)
            acc = acc + jnp.dot(win.astype(bf16), w1_ref[ki * 3 + kj],
                                preferred_element_type=f32)
    y = jnp.maximum(acc * s1_ref[...] + t1_ref[...], 0.0)    # BN(eval)+bias+ReLU

    # ---- conv2: stage intermediate in padded VMEM buffer, 9 per-tap GEMMs -----
    ybuf_ref[1:H + 1, 1:W + 1, :] = y.reshape(H, W, Cout)
    acc2 = jnp.zeros((H * W, Cout), f32)
    for ki in range(3):
        for kj in range(3):
            win = ybuf_ref[ki:ki + H, kj:kj + W, :].reshape(H * W, Cout)
            acc2 = acc2 + jnp.dot(win.astype(bf16), w2_ref[ki * 3 + kj],
                                  preferred_element_type=f32)
    z = jnp.maximum(acc2 * s2_ref[...] + t2_ref[...], 0.0)   # BN(eval)+bias+ReLU

    # ---- lane-dense output store: (Cout, H*W), last dim = H*W ------------------
    o_ref[0] = jnp.transpose(z)


# --------------------------------------------------------------------------
# Host-side parameter preparation
# --------------------------------------------------------------------------
def _fold_bn(gamma, beta, mean, var, conv_bias, eps=1e-5):
    """Fold eval-mode BatchNorm + preceding conv bias into scale/shift rows."""
    scale = gamma * lax.rsqrt(var + eps)
    shift = (conv_bias - mean) * scale + beta
    return (scale.reshape(1, -1).astype(jnp.float32),
            shift.reshape(1, -1).astype(jnp.float32))


def _conv_weight_taps(w_oihw):
    """(Cout, Cin, 3, 3) -> (9, Cin, Cout) bf16 slab; tap index = ki*3 + kj."""
    cout, cin = w_oihw.shape[0], w_oihw.shape[1]
    return jnp.transpose(w_oihw, (2, 3, 1, 0)).reshape(9, cin, cout).astype(jnp.bfloat16)


# --------------------------------------------------------------------------
# Wrapper: one pallas_call over the batch
# --------------------------------------------------------------------------
@jax.jit
def conv_block_forward(x_nchw, p):
    B, Cin, H, W = x_nchw.shape
    Cout = p["conv1_w"].shape[0]

    x = jnp.transpose(x_nchw, (0, 2, 3, 1)).astype(jnp.float32)   # NHWC (kernel layout)

    w1 = _conv_weight_taps(p["conv1_w"])
    w2 = _conv_weight_taps(p["conv2_w"])
    s1, t1 = _fold_bn(p["bn1_g"], p["bn1_b"], p["bn1_m"], p["bn1_v"], p["conv1_b"])
    s2, t2 = _fold_bn(p["bn2_g"], p["bn2_b"], p["bn2_m"], p["bn2_v"], p["conv2_b"])

    kernel = functools.partial(_conv_block_kernel, H=H, W=W, Cin=Cin, Cout=Cout)

    def shared(shape):
        nd = len(shape)
        return pl.BlockSpec(shape, lambda b, _nd=nd: (0,) * _nd)

    out = pl.pallas_call(
        kernel,
        out_shape=jax.ShapeDtypeStruct((B, Cout, H * W), jnp.float32),
        grid=(B,),
        in_specs=[pl.BlockSpec((1, H, W, Cin), lambda b: (b, 0, 0, 0)),
                  shared((9, Cin, Cout)),
                  shared((1, Cout)), shared((1, Cout)),
                  shared((9, Cout, Cout)),
                  shared((1, Cout)), shared((1, Cout))],
        out_specs=pl.BlockSpec((1, Cout, H * W), lambda b: (b, 0, 0)),
        scratch_shapes=[pltpu.VMEM((H + 2, W + 2, Cin), jnp.float32),   # padded x
                        pltpu.VMEM((H + 2, W + 2, Cout), jnp.float32)], # padded mid
        compiler_params=pltpu.CompilerParams(
            dimension_semantics=("parallel",)),
    )(x, w1, s1, t1, w2, s2, t2)

    # (B, Cout, H*W) -> NCHW is a free trailing reshape (no HBM transpose pass).
    return out.reshape(B, Cout, H, W)


# --------------------------------------------------------------------------
# Deterministic parameter init (PyTorch-format shapes)
# --------------------------------------------------------------------------
def init_params(key, cin, cout):
    ks = jax.random.split(key, 12)
    nrm = lambda k, shape, s=0.1: s * jax.random.normal(k, shape, dtype=jnp.float32)
    return {
        "conv1_w": nrm(ks[0], (cout, cin, 3, 3), 0.2),
        "conv1_b": nrm(ks[1], (cout,)),
        "bn1_g": 1.0 + nrm(ks[2], (cout,)),
        "bn1_b": nrm(ks[3], (cout,)),
        "bn1_m": nrm(ks[4], (cout,)),
        "bn1_v": 0.5 + jax.random.uniform(ks[5], (cout,), dtype=jnp.float32),
        "conv2_w": nrm(ks[6], (cout, cout, 3, 3), 0.2),
        "conv2_b": nrm(ks[7], (cout,)),
        "bn2_g": 1.0 + nrm(ks[8], (cout,)),
        "bn2_b": nrm(ks[9], (cout,)),
        "bn2_m": nrm(ks[10], (cout,)),
        "bn2_v": 0.5 + jax.random.uniform(ks[11], (cout,), dtype=jnp.float32),
    }


# --------------------------------------------------------------------------
# Pure-JAX reference (mirrors the PyTorch module, eval-mode BN), NCHW, f32.
# Precision is scoped to the reference convs only (kernel runs bf16 MXU ops).
# --------------------------------------------------------------------------
def reference_forward(x, p, eps=1e-5):
    def conv(inp, w, b):
        out = lax.conv_general_dilated(
            inp, w, window_strides=(1, 1), padding=[(1, 1), (1, 1)],
            dimension_numbers=("NCHW", "OIHW", "NCHW"),
            precision=lax.Precision.HIGHEST)
        return out + b.reshape(1, -1, 1, 1)

    def bn(inp, g, bt, m, v):
        c = lambda a: a.reshape(1, -1, 1, 1)
        return (inp - c(m)) * lax.rsqrt(c(v) + eps) * c(g) + c(bt)

    y = jax.nn.relu(bn(conv(x, p["conv1_w"], p["conv1_b"]),
                       p["bn1_g"], p["bn1_b"], p["bn1_m"], p["bn1_v"]))
    y = jax.nn.relu(bn(conv(y, p["conv2_w"], p["conv2_b"]),
                       p["bn2_g"], p["bn2_b"], p["bn2_m"], p["bn2_v"]))
    return y


# --------------------------------------------------------------------------
if __name__ == "__main__":
    B, Cin, H, W = 2, 4, 16, 16
    Cout = 16

    key = jax.random.PRNGKey(0)
    kx, kp = jax.random.split(key)
    x = jax.random.normal(kx, (B, Cin, H, W), dtype=jnp.float32)
    params = init_params(kp, Cin, Cout)

    out = jax.block_until_ready(conv_block_forward(x, params))
    assert out.shape == (B, Cout, H, W)

    ref = jax.block_until_ready(reference_forward(x, params))
    # Tolerance sized for two chained 3x3 convs with bf16 MXU operands
    # (f32 accumulation) compared against a full-f32 reference.
    np.testing.assert_allclose(np.asarray(out), np.asarray(ref),
                               rtol=5e-2, atol=5e-2)
    print("KERNEL_OK")
</pallas_src>

<mosaic_0001>
module attributes {stable_mosaic.version = 11 : i64} {
  func.func @_conv_block_kernel(%arg0: i32, %arg1: memref<1x16x16x4xf32, #tpu.memory_space<vmem>>, %arg2: memref<9x4x16xbf16, #tpu.memory_space<vmem>>, %arg3: memref<1x16xf32, #tpu.memory_space<vmem>>, %arg4: memref<1x16xf32, #tpu.memory_space<vmem>>, %arg5: memref<9x16x16xbf16, #tpu.memory_space<vmem>>, %arg6: memref<1x16xf32, #tpu.memory_space<vmem>>, %arg7: memref<1x16xf32, #tpu.memory_space<vmem>>, %arg8: memref<1x16x256xf32, #tpu.memory_space<vmem>>, %arg9: memref<18x18x4xf32, #tpu.memory_space<vmem>>, %arg10: memref<18x18x16xf32, #tpu.memory_space<vmem>>) attributes {dimension_semantics = [#tpu.dimension_semantics<parallel>], iteration_bounds = array<i64: 2>, scalar_prefetch = 0 : i64, scratch_operands = 2 : i64, tpu.core_type = #tpu.core_type<tc>, window_params = [{transform_indices = @transform_0, window_bounds = array<i64: 1, 16, 16, 4>}, {pipeline_mode = #tpu.pipeline_mode<synchronous>, transform_indices = @transform_1, window_bounds = array<i64: 9, 4, 16>}, {pipeline_mode = #tpu.pipeline_mode<synchronous>, transform_indices = @transform_2, window_bounds = array<i64: 1, 16>}, {pipeline_mode = #tpu.pipeline_mode<synchronous>, transform_indices = @transform_3, window_bounds = array<i64: 1, 16>}, {pipeline_mode = #tpu.pipeline_mode<synchronous>, transform_indices = @transform_4, window_bounds = array<i64: 9, 16, 16>}, {pipeline_mode = #tpu.pipeline_mode<synchronous>, transform_indices = @transform_5, window_bounds = array<i64: 1, 16>}, {pipeline_mode = #tpu.pipeline_mode<synchronous>, transform_indices = @transform_6, window_bounds = array<i64: 1, 16>}, {transform_indices = @transform_7, window_bounds = array<i64: 1, 16, 256>}]} {
    %cst = arith.constant 0.000000e+00 : f32
    %0 = vector.broadcast %cst : f32 to vector<1x18x4xf32>
    %c0 = arith.constant 0 : index
    %c0_0 = arith.constant 0 : index
    %c0_1 = arith.constant 0 : index
    %1 = vector.load %arg9[%c0, %c0_0, %c0_1] : memref<18x18x4xf32, #tpu.memory_space<vmem>>, vector<1x18x4xf32>
    tpu.vector_store %arg9[%c0, %c0_0, %c0_1], %0 {strides = array<i32>} : memref<18x18x4xf32, #tpu.memory_space<vmem>>, vector<1x18x4xf32>,
    %cst_2 = arith.constant 0.000000e+00 : f32
    %2 = vector.broadcast %cst_2 : f32 to vector<1x18x4xf32>
    %c17 = arith.constant 17 : index
    %c0_3 = arith.constant 0 : index
    %c0_4 = arith.constant 0 : index
    %3 = vector.load %arg9[%c17, %c0_3, %c0_4] : memref<18x18x4xf32, #tpu.memory_space<vmem>>, vector<1x18x4xf32>
    tpu.vector_store %arg9[%c17, %c0_3, %c0_4], %2 {strides = array<i32>} : memref<18x18x4xf32, #tpu.memory_space<vmem>>, vector<1x18x4xf32>,
    %cst_5 = arith.constant 0.000000e+00 : f32
    %4 = vector.broadcast %cst_5 : f32 to vector<18x1x4xf32>
    %c0_6 = arith.constant 0 : index
    %c0_7 = arith.constant 0 : index
    %c0_8 = arith.constant 0 : index
    %5 = vector.load %arg9[%c0_6, %c0_7, %c0_8] : memref<18x18x4xf32, #tpu.memory_space<vmem>>, vector<18x1x4xf32>
    tpu.vector_store %arg9[%c0_6, %c0_7, %c0_8], %4 {strides = array<i32>} : memref<18x18x4xf32, #tpu.memory_space<vmem>>, vector<18x1x4xf32>,
    %cst_9 = arith.constant 0.000000e+00 : f32
    %6 = vector.broadcast %cst_9 : f32 to vector<18x1x4xf32>
    %c0_10 = arith.constant 0 : index
    %c17_11 = arith.constant 17 : index
    %c0_12 = arith.constant 0 : index
    %7 = vector.load %arg9[%c0_10, %c17_11, %c0_12] : memref<18x18x4xf32, #tpu.memory_space<vmem>>, vector<18x1x4xf32>
    tpu.vector_store %arg9[%c0_10, %c17_11, %c0_12], %6 {strides = array<i32>} : memref<18x18x4xf32, #tpu.memory_space<vmem>>, vector<18x1x4xf32>,
    %cst_13 = arith.constant 0.000000e+00 : f32
    %8 = vector.broadcast %cst_13 : f32 to vector<1x18x16xf32>
    %c0_14 = arith.constant 0 : index
    %c0_15 = arith.constant 0 : index
    %c0_16 = arith.constant 0 : index
    %9 = vector.load %arg10[%c0_14, %c0_15, %c0_16] : memref<18x18x16xf32, #tpu.memory_space<vmem>>, vector<1x18x16xf32>
    tpu.vector_store %arg10[%c0_14, %c0_15, %c0_16], %8 {strides = array<i32>} : memref<18x18x16xf32, #tpu.memory_space<vmem>>, vector<1x18x16xf32>,
    %cst_17 = arith.constant 0.000000e+00 : f32
    %10 = vector.broadcast %cst_17 : f32 to vector<1x18x16xf32>
    %c17_18 = arith.constant 17 : index
    %c0_19 = arith.constant 0 : index
    %c0_20 = arith.constant 0 : index
    %11 = vector.load %arg10[%c17_18, %c0_19, %c0_20] : memref<18x18x16xf32, #tpu.memory_space<vmem>>, vector<1x18x16xf32>
    tpu.vector_store %arg10[%c17_18, %c0_19, %c0_20], %10 {strides = array<i32>} : memref<18x18x16xf32, #tpu.memory_space<vmem>>, vector<1x18x16xf32>,
    %cst_21 = arith.constant 0.000000e+00 : f32
    %12 = vector.broadcast %cst_21 : f32 to vector<18x1x16xf32>
    %c0_22 = arith.constant 0 : index
    %c0_23 = arith.constant 0 : index
    %c0_24 = arith.constant 0 : index
    %13 = vector.load %arg10[%c0_22, %c0_23, %c0_24] : memref<18x18x16xf32, #tpu.memory_space<vmem>>, vector<18x1x16xf32>
    tpu.vector_store %arg10[%c0_22, %c0_23, %c0_24], %12 {strides = array<i32>} : memref<18x18x16xf32, #tpu.memory_space<vmem>>, vector<18x1x16xf32>,
    %cst_25 = arith.constant 0.000000e+00 : f32
    %14 = vector.broadcast %cst_25 : f32 to vector<18x1x16xf32>
    %c0_26 = arith.constant 0 : index
    %c17_27 = arith.constant 17 : index
    %c0_28 = arith.constant 0 : index
    %15 = vector.load %arg10[%c0_26, %c17_27, %c0_28] : memref<18x18x16xf32, #tpu.memory_space<vmem>>, vector<18x1x16xf32>
    tpu.vector_store %arg10[%c0_26, %c17_27, %c0_28], %14 {strides = array<i32>} : memref<18x18x16xf32, #tpu.memory_space<vmem>>, vector<18x1x16xf32>,
    %c0_29 = arith.constant 0 : index
    %c0_30 = arith.constant 0 : index
    %c0_31 = arith.constant 0 : index
    %c0_32 = arith.constant 0 : index
    %16 = vector.load %arg1[%c0_29, %c0_30, %c0_31, %c0_32] : memref<1x16x16x4xf32, #tpu.memory_space<vmem>>, vector<1x16x16x4xf32>
    %17 = vector.shape_cast %16 : vector<1x16x16x4xf32> to vector<16x16x4xf32>
    %c1 = arith.constant 1 : index
    %c1_33 = arith.constant 1 : index
    %c0_34 = arith.constant 0 : index
    %18 = vector.load %arg9[%c1, %c1_33, %c0_34] : memref<18x18x4xf32, #tpu.memory_space<vmem>>, vector<16x16x4xf32>
    tpu.vector_store %arg9[%c1, %c1_33, %c0_34], %17 {strides = array<i32>} : memref<18x18x4xf32, #tpu.memory_space<vmem>>, vector<16x16x4xf32>,
    %cst_35 = arith.constant 0.000000e+00 : f32
    %19 = vector.broadcast %cst_35 : f32 to vector<256x16xf32>
    %c0_36 = arith.constant 0 : index
    %c0_37 = arith.constant 0 : index
    %c0_38 = arith.constant 0 : index
    %20 = vector.load %arg9[%c0_36, %c0_37, %c0_38] : memref<18x18x4xf32, #tpu.memory_space<vmem>>, vector<16x16x4xf32>
    %21 = vector.shape_cast %20 : vector<16x16x4xf32> to vector<256x4xf32>
    %22 = arith.truncf %21 : vector<256x4xf32> to vector<256x4xbf16>
    %c0_39 = arith.constant 0 : index
    %c0_40 = arith.constant 0 : index
    %c0_41 = arith.constant 0 : index
    %23 = vector.load %arg2[%c0_39, %c0_40, %c0_41] : memref<9x4x16xbf16, #tpu.memory_space<vmem>>, vector<1x4x16xbf16>
    %24 = vector.shape_cast %23 : vector<1x4x16xbf16> to vector<4x16xbf16>
    %cst_42 = arith.constant dense<0.000000e+00> : vector<256x16xf32>
    %25 = tpu.matmul %22, %24, %cst_42 {dimension_numbers = #tpu.dot_dimension_numbers<[1], [0], [0], [1], [0, 0, 1, 1], [], []>} : vector<256x4xbf16>, vector<4x16xbf16>, vector<256x16xf32> -> vector<256x16xf32>
    %26 = arith.addf %19, %25 : vector<256x16xf32>
    %c0_43 = arith.constant 0 : index
    %c1_44 = arith.constant 1 : index
    %c0_45 = arith.constant 0 : index
    %27 = vector.load %arg9[%c0_43, %c1_44, %c0_45] : memref<18x18x4xf32, #tpu.memory_space<vmem>>, vector<16x16x4xf32>
    %28 = vector.shape_cast %27 : vector<16x16x4xf32> to vector<256x4xf32>
    %29 = arith.truncf %28 : vector<256x4xf32> to vector<256x4xbf16>
    %c1_46 = arith.constant 1 : index
    %c0_47 = arith.constant 0 : index
    %c0_48 = arith.constant 0 : index
    %30 = vector.load %arg2[%c1_46, %c0_47, %c0_48] : memref<9x4x16xbf16, #tpu.memory_space<vmem>>, vector<1x4x16xbf16>
    %31 = vector.shape_cast %30 : vector<1x4x16xbf16> to vector<4x16xbf16>
    %cst_49 = arith.constant dense<0.000000e+00> : vector<256x16xf32>
    %32 = tpu.matmul %29, %31, %cst_49 {dimension_numbers = #tpu.dot_dimension_numbers<[1], [0], [0], [1], [0, 0, 1, 1], [], []>} : vector<256x4xbf16>, vector<4x16xbf16>, vector<256x16xf32> -> vector<256x16xf32>
    %33 = arith.addf %26, %32 : vector<256x16xf32>
    %c0_50 = arith.constant 0 : index
    %c2 = arith.constant 2 : index
    %c0_51 = arith.constant 0 : index
    %34 = vector.load %arg9[%c0_50, %c2, %c0_51] : memref<18x18x4xf32, #tpu.memory_space<vmem>>, vector<16x16x4xf32>
    %35 = vector.shape_cast %34 : vector<16x16x4xf32> to vector<256x4xf32>
    %36 = arith.truncf %35 : vector<256x4xf32> to vector<256x4xbf16>
    %c2_52 = arith.constant 2 : index
    %c0_53 = arith.constant 0 : index
    %c0_54 = arith.constant 0 : index
    %37 = vector.load %arg2[%c2_52, %c0_53, %c0_54] : memref<9x4x16xbf16, #tpu.memory_space<vmem>>, vector<1x4x16xbf16>
    %38 = vector.shape_cast %37 : vector<1x4x16xbf16> to vector<4x16xbf16>
    %cst_55 = arith.constant dense<0.000000e+00> : vector<256x16xf32>
    %39 = tpu.matmul %36, %38, %cst_55 {dimension_numbers = #tpu.dot_dimension_numbers<[1], [0], [0], [1], [0, 0, 1, 1], [], []>} : vector<256x4xbf16>, vector<4x16xbf16>, vector<256x16xf32> -> vector<256x16xf32>
    %40 = arith.addf %33, %39 : vector<256x16xf32>
    %c1_56 = arith.constant 1 : index
    %c0_57 = arith.constant 0 : index
    %c0_58 = arith.constant 0 : index
    %41 = vector.load %arg9[%c1_56, %c0_57, %c0_58] : memref<18x18x4xf32, #tpu.memory_space<vmem>>, vector<16x16x4xf32>
    %42 = vector.shape_cast %41 : vector<16x16x4xf32> to vector<256x4xf32>
    %43 = arith.truncf %42 : vector<256x4xf32> to vector<256x4xbf16>
    %c3 = arith.constant 3 : index
    %c0_59 = arith.constant 0 : index
    %c0_60 = arith.constant 0 : index
    %44 = vector.load %arg2[%c3, %c0_59, %c0_60] : memref<9x4x16xbf16, #tpu.memory_space<vmem>>, vector<1x4x16xbf16>
    %45 = vector.shape_cast %44 : vector<1x4x16xbf16> to vector<4x16xbf16>
    %cst_61 = arith.constant dense<0.000000e+00> : vector<256x16xf32>
    %46 = tpu.matmul %43, %45, %cst_61 {dimension_numbers = #tpu.dot_dimension_numbers<[1], [0], [0], [1], [0, 0, 1, 1], [], []>} : vector<256x4xbf16>, vector<4x16xbf16>, vector<256x16xf32> -> vector<256x16xf32>
    %47 = arith.addf %40, %46 : vector<256x16xf32>
    %c1_62 = arith.constant 1 : index
    %c1_63 = arith.constant 1 : index
    %c0_64 = arith.constant 0 : index
    %48 = vector.load %arg9[%c1_62, %c1_63, %c0_64] : memref<18x18x4xf32, #tpu.memory_space<vmem>>, vector<16x16x4xf32>
    %49 = vector.shape_cast %48 : vector<16x16x4xf32> to vector<256x4xf32>
    %50 = arith.truncf %49 : vector<256x4xf32> to vector<256x4xbf16>
    %c4 = arith.constant 4 : index
    %c0_65 = arith.constant 0 : index
    %c0_66 = arith.constant 0 : index
    %51 = vector.load %arg2[%c4, %c0_65, %c0_66] : memref<9x4x16xbf16, #tpu.memory_space<vmem>>, vector<1x4x16xbf16>
    %52 = vector.shape_cast %51 : vector<1x4x16xbf16> to vector<4x16xbf16>
    %cst_67 = arith.constant dense<0.000000e+00> : vector<256x16xf32>
    %53 = tpu.matmul %50, %52, %cst_67 {dimension_numbers = #tpu.dot_dimension_numbers<[1], [0], [0], [1], [0, 0, 1, 1], [], []>} : vector<256x4xbf16>, vector<4x16xbf16>, vector<256x16xf32> -> vector<256x16xf32>
    %54 = arith.addf %47, %53 : vector<256x16xf32>
    %c1_68 = arith.constant 1 : index
    %c2_69 = arith.constant 2 : index
    %c0_70 = arith.constant 0 : index
    %55 = vector.load %arg9[%c1_68, %c2_69, %c0_70] : memref<18x18x4xf32, #tpu.memory_space<vmem>>, vector<16x16x4xf32>
    %56 = vector.shape_cast %55 : vector<16x16x4xf32> to vector<256x4xf32>
    %57 = arith.truncf %56 : vector<256x4xf32> to vector<256x4xbf16>
    %c5 = arith.constant 5 : index
    %c0_71 = arith.constant 0 : index
    %c0_72 = arith.constant 0 : index
    %58 = vector.load %arg2[%c5, %c0_71, %c0_72] : memref<9x4x16xbf16, #tpu.memory_space<vmem>>, vector<1x4x16xbf16>
    %59 = vector.shape_cast %58 : vector<1x4x16xbf16> to vector<4x16xbf16>
    %cst_73 = arith.constant dense<0.000000e+00> : vector<256x16xf32>
    %60 = tpu.matmul %57, %59, %cst_73 {dimension_numbers = #tpu.dot_dimension_numbers<[1], [0], [0], [1], [0, 0, 1, 1], [], []>} : vector<256x4xbf16>, vector<4x16xbf16>, vector<256x16xf32> -> vector<256x16xf32>
    %61 = arith.addf %54, %60 : vector<256x16xf32>
    %c2_74 = arith.constant 2 : index
    %c0_75 = arith.constant 0 : index
    %c0_76 = arith.constant 0 : index
    %62 = vector.load %arg9[%c2_74, %c0_75, %c0_76] : memref<18x18x4xf32, #tpu.memory_space<vmem>>, vector<16x16x4xf32>
    %63 = vector.shape_cast %62 : vector<16x16x4xf32> to vector<256x4xf32>
    %64 = arith.truncf %63 : vector<256x4xf32> to vector<256x4xbf16>
    %c6 = arith.constant 6 : index
    %c0_77 = arith.constant 0 : index
    %c0_78 = arith.constant 0 : index
    %65 = vector.load %arg2[%c6, %c0_77, %c0_78] : memref<9x4x16xbf16, #tpu.memory_space<vmem>>, vector<1x4x16xbf16>
    %66 = vector.shape_cast %65 : vector<1x4x16xbf16> to vector<4x16xbf16>
    %cst_79 = arith.constant dense<0.000000e+00> : vector<256x16xf32>
    %67 = tpu.matmul %64, %66, %cst_79 {dimension_numbers = #tpu.dot_dimension_numbers<[1], [0], [0], [1], [0, 0, 1, 1], [], []>} : vector<256x4xbf16>, vector<4x16xbf16>, vector<256x16xf32> -> vector<256x16xf32>
    %68 = arith.addf %61, %67 : vector<256x16xf32>
    %c2_80 = arith.constant 2 : index
    %c1_81 = arith.constant 1 : index
    %c0_82 = arith.constant 0 : index
    %69 = vector.load %arg9[%c2_80, %c1_81, %c0_82] : memref<18x18x4xf32, #tpu.memory_space<vmem>>, vector<16x16x4xf32>
    %70 = vector.shape_cast %69 : vector<16x16x4xf32> to vector<256x4xf32>
    %71 = arith.truncf %70 : vector<256x4xf32> to vector<256x4xbf16>
    %c7 = arith.constant 7 : index
    %c0_83 = arith.constant 0 : index
    %c0_84 = arith.constant 0 : index
    %72 = vector.load %arg2[%c7, %c0_83, %c0_84] : memref<9x4x16xbf16, #tpu.memory_space<vmem>>, vector<1x4x16xbf16>
    %73 = vector.shape_cast %72 : vector<1x4x16xbf16> to vector<4x16xbf16>
    %cst_85 = arith.constant dense<0.000000e+00> : vector<256x16xf32>
    %74 = tpu.matmul %71, %73, %cst_85 {dimension_numbers = #tpu.dot_dimension_numbers<[1], [0], [0], [1], [0, 0, 1, 1], [], []>} : vector<256x4xbf16>, vector<4x16xbf16>, vector<256x16xf32> -> vector<256x16xf32>
    %75 = arith.addf %68, %74 : vector<256x16xf32>
    %c2_86 = arith.constant 2 : index
    %c2_87 = arith.constant 2 : index
    %c0_88 = arith.constant 0 : index
    %76 = vector.load %arg9[%c2_86, %c2_87, %c0_88] : memref<18x18x4xf32, #tpu.memory_space<vmem>>, vector<16x16x4xf32>
    %77 = vector.shape_cast %76 : vector<16x16x4xf32> to vector<256x4xf32>
    %78 = arith.truncf %77 : vector<256x4xf32> to vector<256x4xbf16>
    %c8 = arith.constant 8 : index
    %c0_89 = arith.constant 0 : index
    %c0_90 = arith.constant 0 : index
    %79 = vector.load %arg2[%c8, %c0_89, %c0_90] : memref<9x4x16xbf16, #tpu.memory_space<vmem>>, vector<1x4x16xbf16>
    %80 = vector.shape_cast %79 : vector<1x4x16xbf16> to vector<4x16xbf16>
    %cst_91 = arith.constant dense<0.000000e+00> : vector<256x16xf32>
    %81 = tpu.matmul %78, %80, %cst_91 {dimension_numbers = #tpu.dot_dimension_numbers<[1], [0], [0], [1], [0, 0, 1, 1], [], []>} : vector<256x4xbf16>, vector<4x16xbf16>, vector<256x16xf32> -> vector<256x16xf32>
    %82 = arith.addf %75, %81 : vector<256x16xf32>
    %c0_92 = arith.constant 0 : index
    %c0_93 = arith.constant 0 : index
    %83 = vector.load %arg3[%c0_92, %c0_93] : memref<1x16xf32, #tpu.memory_space<vmem>>, vector<1x16xf32>
    %84 = vector.broadcast %83 : vector<1x16xf32> to vector<256x16xf32>
    %85 = arith.mulf %82, %84 : vector<256x16xf32>
    %c0_94 = arith.constant 0 : index
    %c0_95 = arith.constant 0 : index
    %86 = vector.load %arg4[%c0_94, %c0_95] : memref<1x16xf32, #tpu.memory_space<vmem>>, vector<1x16xf32>
    %87 = vector.broadcast %86 : vector<1x16xf32> to vector<256x16xf32>
    %88 = arith.addf %85, %87 : vector<256x16xf32>
    %cst_96 = arith.constant 0.000000e+00 : f32
    %89 = vector.broadcast %cst_96 : f32 to vector<256x16xf32>
    %90 = arith.maximumf %88, %89 : vector<256x16xf32>
    %91 = vector.shape_cast %90 : vector<256x16xf32> to vector<16x16x16xf32>
    %c1_97 = arith.constant 1 : index
    %c1_98 = arith.constant 1 : index
    %c0_99 = arith.constant 0 : index
    %92 = vector.load %arg10[%c1_97, %c1_98, %c0_99] : memref<18x18x16xf32, #tpu.memory_space<vmem>>, vector<16x16x16xf32>
    tpu.vector_store %arg10[%c1_97, %c1_98, %c0_99], %91 {strides = array<i32>} : memref<18x18x16xf32, #tpu.memory_space<vmem>>, vector<16x16x16xf32>,
    %cst_100 = arith.constant 0.000000e+00 : f32
    %93 = vector.broadcast %cst_100 : f32 to vector<256x16xf32>
    %c0_101 = arith.constant 0 : index
    %c0_102 = arith.constant 0 : index
    %c0_103 = arith.constant 0 : index
    %94 = vector.load %arg10[%c0_101, %c0_102, %c0_103] : memref<18x18x16xf32, #tpu.memory_space<vmem>>, vector<16x16x16xf32>
    %95 = vector.shape_cast %94 : vector<16x16x16xf32> to vector<256x16xf32>
    %96 = arith.truncf %95 : vector<256x16xf32> to vector<256x16xbf16>
    %c0_104 = arith.constant 0 : index
    %c0_105 = arith.constant 0 : index
    %c0_106 = arith.constant 0 : index
    %97 = vector.load %arg5[%c0_104, %c0_105, %c0_106] : memref<9x16x16xbf16, #tpu.memory_space<vmem>>, vector<1x16x16xbf16>
    %98 = vector.shape_cast %97 : vector<1x16x16xbf16> to vector<16x16xbf16>
    %cst_107 = arith.constant dense<0.000000e+00> : vector<256x16xf32>
    %99 = tpu.matmul %96, %98, %cst_107 {dimension_numbers = #tpu.dot_dimension_numbers<[1], [0], [0], [1], [0, 0, 1, 1], [], []>} : vector<256x16xbf16>, vector<16x16xbf16>, vector<256x16xf32> -> vector<256x16xf32>
    %100 = arith.addf %93, %99 : vector<256x16xf32>
    %c0_108 = arith.constant 0 : index
    %c1_109 = arith.constant 1 : index
    %c0_110 = arith.constant 0 : index
    %101 = vector.load %arg10[%c0_108, %c1_109, %c0_110] : memref<18x18x16xf32, #tpu.memory_space<vmem>>, vector<16x16x16xf32>
    %102 = vector.shape_cast %101 : vector<16x16x16xf32> to vector<256x16xf32>
    %103 = arith.truncf %102 : vector<256x16xf32> to vector<256x16xbf16>
    %c1_111 = arith.constant 1 : index
    %c0_112 = arith.constant 0 : index
    %c0_113 = arith.constant 0 : index
    %104 = vector.load %arg5[%c1_111, %c0_112, %c0_113] : memref<9x16x16xbf16, #tpu.memory_space<vmem>>, vector<1x16x16xbf16>
    %105 = vector.shape_cast %104 : vector<1x16x16xbf16> to vector<16x16xbf16>
    %cst_114 = arith.constant dense<0.000000e+00> : vector<256x16xf32>
    %106 = tpu.matmul %103, %105, %cst_114 {dimension_numbers = #tpu.dot_dimension_numbers<[1], [0], [0], [1], [0, 0, 1, 1], [], []>} : vector<256x16xbf16>, vector<16x16xbf16>, vector<256x16xf32> -> vector<256x16xf32>
    %107 = arith.addf %100, %106 : vector<256x16xf32>
    %c0_115 = arith.constant 0 : index
    %c2_116 = arith.constant 2 : index
    %c0_117 = arith.constant 0 : index
    %108 = vector.load %arg10[%c0_115, %c2_116, %c0_117] : memref<18x18x16xf32, #tpu.memory_space<vmem>>, vector<16x16x16xf32>
    %109 = vector.shape_cast %108 : vector<16x16x16xf32> to vector<256x16xf32>
    %110 = arith.truncf %109 : vector<256x16xf32> to vector<256x16xbf16>
    %c2_118 = arith.constant 2 : index
    %c0_119 = arith.constant 0 : index
    %c0_120 = arith.constant 0 : index
    %111 = vector.load %arg5[%c2_118, %c0_119, %c0_120] : memref<9x16x16xbf16, #tpu.memory_space<vmem>>, vector<1x16x16xbf16>
    %112 = vector.shape_cast %111 : vector<1x16x16xbf16> to vector<16x16xbf16>
    %cst_121 = arith.constant dense<0.000000e+00> : vector<256x16xf32>
    %113 = tpu.matmul %110, %112, %cst_121 {dimension_numbers = #tpu.dot_dimension_numbers<[1], [0], [0], [1], [0, 0, 1, 1], [], []>} : vector<256x16xbf16>, vector<16x16xbf16>, vector<256x16xf32> -> vector<256x16xf32>
    %114 = arith.addf %107, %113 : vector<256x16xf32>
    %c1_122 = arith.constant 1 : index
    %c0_123 = arith.constant 0 : index
    %c0_124 = arith.constant 0 : index
    %115 = vector.load %arg10[%c1_122, %c0_123, %c0_124] : memref<18x18x16xf32, #tpu.memory_space<vmem>>, vector<16x16x16xf32>
    %116 = vector.shape_cast %115 : vector<16x16x16xf32> to vector<256x16xf32>
    %117 = arith.truncf %116 : vector<256x16xf32> to vector<256x16xbf16>
    %c3_125 = arith.constant 3 : index
    %c0_126 = arith.constant 0 : index
    %c0_127 = arith.constant 0 : index
    %118 = vector.load %arg5[%c3_125, %c0_126, %c0_127] : memref<9x16x16xbf16, #tpu.memory_space<vmem>>, vector<1x16x16xbf16>
    %119 = vector.shape_cast %118 : vector<1x16x16xbf16> to vector<16x16xbf16>
    %cst_128 = arith.constant dense<0.000000e+00> : vector<256x16xf32>
    %120 = tpu.matmul %117, %119, %cst_128 {dimension_numbers = #tpu.dot_dimension_numbers<[1], [0], [0], [1], [0, 0, 1, 1], [], []>} : vector<256x16xbf16>, vector<16x16xbf16>, vector<256x16xf32> -> vector<256x16xf32>
    %121 = arith.addf %114, %120 : vector<256x16xf32>
    %c1_129 = arith.constant 1 : index
    %c1_130 = arith.constant 1 : index
    %c0_131 = arith.constant 0 : index
    %122 = vector.load %arg10[%c1_129, %c1_130, %c0_131] : memref<18x18x16xf32, #tpu.memory_space<vmem>>, vector<16x16x16xf32>
    %123 = vector.shape_cast %122 : vector<16x16x16xf32> to vector<256x16xf32>
    %124 = arith.truncf %123 : vector<256x16xf32> to vector<256x16xbf16>
    %c4_132 = arith.constant 4 : index
    %c0_133 = arith.constant 0 : index
    %c0_134 = arith.constant 0 : index
    %125 = vector.load %arg5[%c4_132, %c0_133, %c0_134] : memref<9x16x16xbf16, #tpu.memory_space<vmem>>, vector<1x16x16xbf16>
    %126 = vector.shape_cast %125 : vector<1x16x16xbf16> to vector<16x16xbf16>
    %cst_135 = arith.constant dense<0.000000e+00> : vector<256x16xf32>
    %127 = tpu.matmul %124, %126, %cst_135 {dimension_numbers = #tpu.dot_dimension_numbers<[1], [0], [0], [1], [0, 0, 1, 1], [], []>} : vector<256x16xbf16>, vector<16x16xbf16>, vector<256x16xf32> -> vector<256x16xf32>
    %128 = arith.addf %121, %127 : vector<256x16xf32>
    %c1_136 = arith.constant 1 : index
    %c2_137 = arith.constant 2 : index
    %c0_138 = arith.constant 0 : index
    %129 = vector.load %arg10[%c1_136, %c2_137, %c0_138] : memref<18x18x16xf32, #tpu.memory_space<vmem>>, vector<16x16x16xf32>
    %130 = vector.shape_cast %129 : vector<16x16x16xf32> to vector<256x16xf32>
    %131 = arith.truncf %130 : vector<256x16xf32> to vector<256x16xbf16>
    %c5_139 = arith.constant 5 : index
    %c0_140 = arith.constant 0 : index
    %c0_141 = arith.constant 0 : index
    %132 = vector.load %arg5[%c5_139, %c0_140, %c0_141] : memref<9x16x16xbf16, #tpu.memory_space<vmem>>, vector<1x16x16xbf16>
    %133 = vector.shape_cast %132 : vector<1x16x16xbf16> to vector<16x16xbf16>
    %cst_142 = arith.constant dense<0.000000e+00> : vector<256x16xf32>
    %134 = tpu.matmul %131, %133, %cst_142 {dimension_numbers = #tpu.dot_dimension_numbers<[1], [0], [0], [1], [0, 0, 1, 1], [], []>} : vector<256x16xbf16>, vector<16x16xbf16>, vector<256x16xf32> -> vector<256x16xf32>
    %135 = arith.addf %128, %134 : vector<256x16xf32>
    %c2_143 = arith.constant 2 : index
    %c0_144 = arith.constant 0 : index
    %c0_145 = arith.constant 0 : index
    %136 = vector.load %arg10[%c2_143, %c0_144, %c0_145] : memref<18x18x16xf32, #tpu.memory_space<vmem>>, vector<16x16x16xf32>
    %137 = vector.shape_cast %136 : vector<16x16x16xf32> to vector<256x16xf32>
    %138 = arith.truncf %137 : vector<256x16xf32> to vector<256x16xbf16>
    %c6_146 = arith.constant 6 : index
    %c0_147 = arith.constant 0 : index
    %c0_148 = arith.constant 0 : index
    %139 = vector.load %arg5[%c6_146, %c0_147, %c0_148] : memref<9x16x16xbf16, #tpu.memory_space<vmem>>, vector<1x16x16xbf16>
    %140 = vector.shape_cast %139 : vector<1x16x16xbf16> to vector<16x16xbf16>
    %cst_149 = arith.constant dense<0.000000e+00> : vector<256x16xf32>
    %141 = tpu.matmul %138, %140, %cst_149 {dimension_numbers = #tpu.dot_dimension_numbers<[1], [0], [0], [1], [0, 0, 1, 1], [], []>} : vector<256x16xbf16>, vector<16x16xbf16>, vector<256x16xf32> -> vector<256x16xf32>
    %142 = arith.addf %135, %141 : vector<256x16xf32>
    %c2_150 = arith.constant 2 : index
    %c1_151 = arith.constant 1 : index
    %c0_152 = arith.constant 0 : index
    %143 = vector.load %arg10[%c2_150, %c1_151, %c0_152] : memref<18x18x16xf32, #tpu.memory_space<vmem>>, vector<16x16x16xf32>
    %144 = vector.shape_cast %143 : vector<16x16x16xf32> to vector<256x16xf32>
    %145 = arith.truncf %144 : vector<256x16xf32> to vector<256x16xbf16>
    %c7_153 = arith.constant 7 : index
    %c0_154 = arith.constant 0 : index
    %c0_155 = arith.constant 0 : index
    %146 = vector.load %arg5[%c7_153, %c0_154, %c0_155] : memref<9x16x16xbf16, #tpu.memory_space<vmem>>, vector<1x16x16xbf16>
    %147 = vector.shape_cast %146 : vector<1x16x16xbf16> to vector<16x16xbf16>
    %cst_156 = arith.constant dense<0.000000e+00> : vector<256x16xf32>
    %148 = tpu.matmul %145, %147, %cst_156 {dimension_numbers = #tpu.dot_dimension_numbers<[1], [0], [0], [1], [0, 0, 1, 1], [], []>} : vector<256x16xbf16>, vector<16x16xbf16>, vector<256x16xf32> -> vector<256x16xf32>
    %149 = arith.addf %142, %148 : vector<256x16xf32>
    %c2_157 = arith.constant 2 : index
    %c2_158 = arith.constant 2 : index
    %c0_159 = arith.constant 0 : index
    %150 = vector.load %arg10[%c2_157, %c2_158, %c0_159] : memref<18x18x16xf32, #tpu.memory_space<vmem>>, vector<16x16x16xf32>
    %151 = vector.shape_cast %150 : vector<16x16x16xf32> to vector<256x16xf32>
    %152 = arith.truncf %151 : vector<256x16xf32> to vector<256x16xbf16>
    %c8_160 = arith.constant 8 : index
    %c0_161 = arith.constant 0 : index
    %c0_162 = arith.constant 0 : index
    %153 = vector.load %arg5[%c8_160, %c0_161, %c0_162] : memref<9x16x16xbf16, #tpu.memory_space<vmem>>, vector<1x16x16xbf16>
    %154 = vector.shape_cast %153 : vector<1x16x16xbf16> to vector<16x16xbf16>
    %cst_163 = arith.constant dense<0.000000e+00> : vector<256x16xf32>
    %155 = tpu.matmul %152, %154, %cst_163 {dimension_numbers = #tpu.dot_dimension_numbers<[1], [0], [0], [1], [0, 0, 1, 1], [], []>} : vector<256x16xbf16>, vector<16x16xbf16>, vector<256x16xf32> -> vector<256x16xf32>
    %156 = arith.addf %149, %155 : vector<256x16xf32>
    %c0_164 = arith.constant 0 : index
    %c0_165 = arith.constant 0 : index
    %157 = vector.load %arg6[%c0_164, %c0_165] : memref<1x16xf32, #tpu.memory_space<vmem>>, vector<1x16xf32>
    %158 = vector.broadcast %157 : vector<1x16xf32> to vector<256x16xf32>
    %159 = arith.mulf %156, %158 : vector<256x16xf32>
    %c0_166 = arith.constant 0 : index
    %c0_167 = arith.constant 0 : index
    %160 = vector.load %arg7[%c0_166, %c0_167] : memref<1x16xf32, #tpu.memory_space<vmem>>, vector<1x16xf32>
    %161 = vector.broadcast %160 : vector<1x16xf32> to vector<256x16xf32>
    %162 = arith.addf %159, %161 : vector<256x16xf32>
    %cst_168 = arith.constant 0.000000e+00 : f32
    %163 = vector.broadcast %cst_168 : f32 to vector<256x16xf32>
    %164 = arith.maximumf %162, %163 : vector<256x16xf32>
    %165 = tpu.transpose %164, [1, 0] : vector<256x16xf32> -> vector<16x256xf32>
    %c0_169 = arith.constant 0 : index
    %c0_170 = arith.constant 0 : index
    %c0_171 = arith.constant 0 : index
    %166 = vector.load %arg8[%c0_169, %c0_170, %c0_171] : memref<1x16x256xf32, #tpu.memory_space<vmem>>, vector<1x16x256xf32>
    %167 = vector.shape_cast %166 : vector<1x16x256xf32> to vector<16x256xf32>
    %168 = vector.shape_cast %165 : vector<16x256xf32> to vector<1x16x256xf32>
    tpu.vector_store %arg8[%c0_169, %c0_170, %c0_171], %168 {strides = array<i32>} : memref<1x16x256xf32, #tpu.memory_space<vmem>>, vector<1x16x256xf32>,
    return
  }
  func.func @transform_0(%arg0: i32) -> (i32, i32, i32, i32) {
    %c0_i32 = arith.constant 0 : i32
    %c0_i32_0 = arith.constant 0 : i32
    %c0_i32_1 = arith.constant 0 : i32
    %c0_i32_2 = arith.constant 0 : i32
    return %arg0, %c0_i32, %c0_i32_0, %c0_i32_1 : i32, i32, i32, i32
  }
  func.func @transform_1(%arg0: i32) -> (i32, i32, i32) {
    %c0_i32 = arith.constant 0 : i32
    %c0_i32_0 = arith.constant 0 : i32
    %c0_i32_1 = arith.constant 0 : i32
    %c0_i32_2 = arith.constant 0 : i32
    return %c0_i32, %c0_i32_0, %c0_i32_1 : i32, i32, i32
  }
  func.func @transform_2(%arg0: i32) -> (i32, i32) {
    %c0_i32 = arith.constant 0 : i32
    %c0_i32_0 = arith.constant 0 : i32
    %c0_i32_1 = arith.constant 0 : i32
    return %c0_i32, %c0_i32_0 : i32, i32
  }
  func.func @transform_3(%arg0: i32) -> (i32, i32) {
    %c0_i32 = arith.constant 0 : i32
    %c0_i32_0 = arith.constant 0 : i32
    %c0_i32_1 = arith.constant 0 : i32
    return %c0_i32, %c0_i32_0 : i32, i32
  }
  func.func @transform_4(%arg0: i32) -> (i32, i32, i32) {
    %c0_i32 = arith.constant 0 : i32
    %c0_i32_0 = arith.constant 0 : i32
    %c0_i32_1 = arith.constant 0 : i32
    %c0_i32_2 = arith.constant 0 : i32
    return %c0_i32, %c0_i32_0, %c0_i32_1 : i32, i32, i32
  }
  func.func @transform_5(%arg0: i32) -> (i32, i32) {
    %c0_i32 = arith.constant 0 : i32
    %c0_i32_0 = arith.constant 0 : i32
    %c0_i32_1 = arith.constant 0 : i32
    return %c0_i32, %c0_i32_0 : i32, i32
  }
  func.func @transform_6(%arg0: i32) -> (i32, i32) {
    %c0_i32 = arith.constant 0 : i32
    %c0_i32_0 = arith.constant 0 : i32
    %c0_i32_1 = arith.constant 0 : i32
    return %c0_i32, %c0_i32_0 : i32, i32
  }
  func.func @transform_7(%arg0: i32) -> (i32, i32, i32) {
    %c0_i32 = arith.constant 0 : i32
    %c0_i32_0 = arith.constant 0 : i32
    %c0_i32_1 = arith.constant 0 : i32
    return %arg0, %c0_i32, %c0_i32_0 : i32, i32, i32
  }
}

</mosaic_0001>

<bundles_post_ra>
// kernel: conv_block_forward.1
= control target key start
LH: loop header
LB: loop body
LE: loop exit
PB: predicated region body
PF: predicated region fallthrough
CT: control target
= control target key end

     0   :  { %s7858_s24 = smov 0   ;;  %s9147_s0 = inlined_call_operand.vmem [shape: f32[2,16,16,4], index: 0, kind: input, shape index: {}]   ;;  %s9148_s1 = inlined_call_operand.vmem [shape: bf16[9,4,16], index: 1, kind: input, shape index: {}]   ;;  %s9149_s2 = inlined_call_operand.vmem [shape: f32[1,16], index: 2, kind: input, shape index: {}]   ;;  %s9150_s3 = inlined_call_operand.vmem [shape: f32[1,16], index: 3, kind: input, shape index: {}]   ;;  %s9151_s4 = inlined_call_operand.vmem [shape: bf16[9,16,16], index: 4, kind: input, shape index: {}]   ;;  %s9152_s5 = inlined_call_operand.vmem [shape: f32[1,16], index: 5, kind: input, shape index: {}]   ;;  %s9153_s6 = inlined_call_operand.vmem [shape: f32[1,16], index: 6, kind: input, shape index: {}]   ;;  %s9154_s7 = inlined_call_operand.vmem [shape: f32[2,16,256], index: 7, kind: output, shape index: {}]  }
   0x1 LB: > { %s6014_s25 = sadd.s32 4294967295, %s7815_s24   ;;  %p6018_p0 = scmp.ge.s32.totalorder %s7815_s24, 1  ;;  %s7815_s24 = sphi %s7858_s24, %s17_s24  }
   0x2   : > { %p237_p1 = scmp.lt.s32.totalorder %s7815_s24, 3 }
   0x4   : > { %p238_p2 = pnand %p6018_p0, %p237_p1 }
   0x5   : > { %v6023_v0 = vld [vmem:[%s9148_s1 + $0x2] sm:$0x3] (!%p238_p2)  ;;  %vm584_vm0 = vcmask (!%p238_p2), 1041408   ;;  %vm280_vm1 = vcmask (!%p238_p2), 31744   ;;  %vm283_vm2 = vcmask (!%p238_p2), 25600   ;;  %v7817_v2 = vmov (!%p238_p2), 0.0  }
   0x6   : > { %241 = sbr.rel (%p238_p2) target bundleno = 1677 (0x68d), region = 48  ;;  %7782 = vmatprep.subr.msk.bf16.mxu0 (!%p238_p2), %vm584_vm0, %v6023_v0  ;;  %v586_v1 = vsel (!%p238_p2), %vm584_vm0, %v6023_v0, 0  ;;  %281 = vst.msk [vmem:[#allocation2] sm:$0xff] (!%p238_p2), %vm280_vm1, %v7817_v2  ;;  %282 = vst.msk [vmem:[#allocation2 + $0x8] sm:$0xff] (!%p238_p2), %vm280_vm1, %v7817_v2  ;;  %vm289_vm3 = vcmask (!%p238_p2), 24576   ;;  %p7888_p3 = scmp.lt.s32.totalorder (!%p238_p2), %s6014_s25, 1 }
   0x7   : > { %284 = vst.msk [vmem:[#allocation2 + $0x10] sm:$0x3] (!%p238_p2), %vm283_vm2, %v7817_v2  ;;  %288 = vst.msk [vmem:[#allocation2 + $0x1a8] sm:$0x3] (!%p238_p2), %vm283_vm2, %v7817_v2  ;;  %v7884_v3 = vld [vmem:[%s9148_s1] sm:$0x3] (!%p238_p2)  ;;  %6659 = vmatpush3.bf16.msra.mxu0 (!%p238_p2), %v586_v1 }
   0x8   : > { %286 = vst.msk [vmem:[#allocation2 + $0x198] sm:$0xff] (!%p238_p2), %vm280_vm1, %v7817_v2  ;;  %287 = vst.msk [vmem:[#allocation2 + $0x1a0] sm:$0xff] (!%p238_p2), %vm280_vm1, %v7817_v2  ;;  %7783 = vmatprep.subr.msk.bf16.mxu0 (!%p238_p2), %vm584_vm0, %v7884_v3  ;;  %v798_v33 = vsel (!%p238_p2), %vm584_vm0, %v7884_v3, 0  ;;  %v8036_v38 = vld [vmem:[%s9148_s1 + $0x4] sm:$0x3] (!%p238_p2)  ;;  %vm326_vm4 = vcmask (!%p238_p2), 130048  }
   0x9   : > { %290 = vst.msk [vmem:[#allocation2] sm:$0x1] (!%p238_p2), %vm289_vm3, %v7817_v2  ;;  %308 = vst.msk [vmem:[#allocation2 + $0x11] sm:$0x1] (!%p238_p2), %vm289_vm3, %v7817_v2  ;;  %vm335_vm5 = vcmask (!%p238_p2), 122880   ;;  %vm329_vm6 = vcmask (!%p238_p2), 123904  }
   0xa   : > { %325 = vst.msk [vmem:[#allocation2 + $0x1a9] sm:$0x1] (!%p238_p2), %vm289_vm3, %v7817_v2  ;;  %291 = vst.msk [vmem:[#allocation2 + $0x18] sm:$0x1] (!%p238_p2), %vm289_vm3, %v7817_v2 }
   0xb   : > { %292 = vst.msk [vmem:[#allocation2 + $0x30] sm:$0x1] (!%p238_p2), %vm289_vm3, %v7817_v2  ;;  %293 = vst.msk [vmem:[#allocation2 + $0x48] sm:$0x1] (!%p238_p2), %vm289_vm3, %v7817_v2 }
   0xc   : > { %294 = vst.msk [vmem:[#allocation2 + $0x60] sm:$0x1] (!%p238_p2), %vm289_vm3, %v7817_v2  ;;  %295 = vst.msk [vmem:[#allocation2 + $0x78] sm:$0x1] (!%p238_p2), %vm289_vm3, %v7817_v2 }
   0xd   : > { %296 = vst.msk [vmem:[#allocation2 + $0x90] sm:$0x1] %vm289_vm3, %v7817_v2  ;;  %297 = vst.msk [vmem:[#allocation2 + $0xa8] sm:$0x1] %vm289_vm3, %v7817_v2  ;;  %s9157_s25 = smov (!%p7888_p3, %s6014_s25), 1  ;;  %v486_v7 = vld [vmem:[#allocation2 + $0x1] sm:$0xff] }
   0xe   : > { %298 = vst.msk [vmem:[#allocation2 + $0xc0] sm:$0x1] %vm289_vm3, %v7817_v2  ;;  %299 = vst.msk [vmem:[#allocation2 + $0xd8] sm:$0x1] %vm289_vm3, %v7817_v2  ;;  %s6350_s8 = sshll.u32 %s9157_s25, 8  ;;  %v487_v8 = vld [vmem:[#allocation2 + $0x9] sm:$0xff] }
   0xf   : > { %300 = vst.msk [vmem:[#allocation2 + $0xf0] sm:$0x1] %vm289_vm3, %v7817_v2  ;;  %301 = vst.msk [vmem:[#allocation2 + $0x108] sm:$0x1] %vm289_vm3, %v7817_v2  ;;  %s7976_s11 = scalar_lea.vmem %s9147_s0, %s6350_s8  ;;  %v518_v10 = vpack.c.bf16 %v487_v8, %v486_v7  ;;  %s6351_s10 = sshll.u32 %s9157_s25, 5 }
  0x10   : > { %302 = vst.msk [vmem:[#allocation2 + $0x120] sm:$0x1] %vm289_vm3, %v7817_v2  ;;  %303 = vst.msk [vmem:[#allocation2 + $0x138] sm:$0x1] %vm289_vm3, %v7817_v2  ;;  %v372_v4 = vld [vmem:[%s7976_s11] sm:$0xff]  ;;  %v373_v5 = vld [vmem:[%s7976_s11 + $0x8] sm:$0xff]  ;;  %s278_s13 = scalar_lea.vmem %s9154_s7, %s6351_s10 }
  0x11   : > { %304 = vst.msk [vmem:[#allocation2 + $0x150] sm:$0x1] %vm289_vm3, %v7817_v2  ;;  %305 = vst.msk [vmem:[#allocation2 + $0x168] sm:$0x1] %vm289_vm3, %v7817_v2  ;;  %v374_v6 = vld [vmem:[%s7976_s11 + $0x10] sm:$0xff]  ;;  %v375_v9 = vld [vmem:[%s7976_s11 + $0x18] sm:$0xff]  ;;  %6660 = vmatprep.mubr.msk.bf16.mxu0 %vm280_vm1, %v518_v10 }
  0x12   : > { %306 = vst.msk [vmem:[#allocation2 + $0x180] sm:$0x1] %vm289_vm3, %v7817_v2  ;;  %309 = vst.msk [vmem:[#allocation2 + $0x29] sm:$0x1] %vm289_vm3, %v7817_v2  ;;  %v376_v11 = vld [vmem:[%s7976_s11 + $0x20] sm:$0xff]  ;;  %v377_v12 = vld [vmem:[%s7976_s11 + $0x28] sm:$0xff] }
  0x13   : > { %310 = vst.msk [vmem:[#allocation2 + $0x41] sm:$0x1] %vm289_vm3, %v7817_v2  ;;  %311 = vst.msk [vmem:[#allocation2 + $0x59] sm:$0x1] %vm289_vm3, %v7817_v2  ;;  %v378_v13 = vld [vmem:[%s7976_s11 + $0x30] sm:$0xff]  ;;  %v379_v14 = vld [vmem:[%s7976_s11 + $0x38] sm:$0xff] }
  0x14   : > { %312 = vst.msk [vmem:[#allocation2 + $0x71] sm:$0x1] %vm289_vm3, %v7817_v2  ;;  %313 = vst.msk [vmem:[#allocation2 + $0x89] sm:$0x1] %vm289_vm3, %v7817_v2  ;;  %v380_v15 = vld [vmem:[%s7976_s11 + $0x40] sm:$0xff]  ;;  %v381_v16 = vld [vmem:[%s7976_s11 + $0x48] sm:$0xff] }
  0x15   : > { %314 = vst.msk [vmem:[#allocation2 + $0xa1] sm:$0x1] %vm289_vm3, %v7817_v2  ;;  %315 = vst.msk [vmem:[#allocation2 + $0xb9] sm:$0x1] %vm289_vm3, %v7817_v2  ;;  %v382_v17 = vld [vmem:[%s7976_s11 + $0x50] sm:$0xff]  ;;  %v383_v18 = vld [vmem:[%s7976_s11 + $0x58] sm:$0xff] }
  0x16   : > { %316 = vst.msk [vmem:[#allocation2 + $0xd1] sm:$0x1] %vm289_vm3, %v7817_v2  ;;  %317 = vst.msk [vmem:[#allocation2 + $0xe9] sm:$0x1] %vm289_vm3, %v7817_v2  ;;  %v384_v19 = vld [vmem:[%s7976_s11 + $0x60] sm:$0xff]  ;;  %v385_v20 = vld [vmem:[%s7976_s11 + $0x68] sm:$0xff] }
  0x17   : > { %318 = vst.msk [vmem:[#allocation2 + $0x101] sm:$0x1] %vm289_vm3, %v7817_v2  ;;  %319 = vst.msk [vmem:[#allocation2 + $0x119] sm:$0x1] %vm289_vm3, %v7817_v2  ;;  %v386_v21 = vld [vmem:[%s7976_s11 + $0x70] sm:$0xff]  ;;  %v387_v22 = vld [vmem:[%s7976_s11 + $0x78] sm:$0xff] }
  0x18   : > { %320 = vst.msk [vmem:[#allocation2 + $0x131] sm:$0x1] %vm289_vm3, %v7817_v2  ;;  %321 = vst.msk [vmem:[#allocation2 + $0x149] sm:$0x1] %vm289_vm3, %v7817_v2  ;;  %v388_v23 = vld [vmem:[%s7976_s11 + $0x80] sm:$0xff]  ;;  %v389_v24 = vld [vmem:[%s7976_s11 + $0x88] sm:$0xff] }
  0x19   : > { %322 = vst.msk [vmem:[#allocation2 + $0x161] sm:$0x1] %vm289_vm3, %v7817_v2  ;;  %323 = vst.msk [vmem:[#allocation2 + $0x179] sm:$0x1] %vm289_vm3, %v7817_v2  ;;  %v390_v25 = vld [vmem:[%s7976_s11 + $0x90] sm:$0xff]  ;;  %v391_v26 = vld [vmem:[%s7976_s11 + $0x98] sm:$0xff] }
  0x1a   : > { %324 = vst.msk [vmem:[#allocation2 + $0x191] sm:$0x1] %vm289_vm3, %v7817_v2  ;;  %307 = vst.msk [vmem:[#allocation2 + $0x198] sm:$0x1] %vm289_vm3, %v7817_v2  ;;  %v392_v27 = vld [vmem:[%s7976_s11 + $0xa0] sm:$0xff]  ;;  %v393_v28 = vld [vmem:[%s7976_s11 + $0xa8] sm:$0xff] }
  0x1b   : > { %405 = vst.msk [vmem:[#allocation2 + $0x19] sm:$0xff] %vm280_vm1, %v372_v4  ;;  %406 = vst.msk [vmem:[#allocation2 + $0x21] sm:$0xff] %vm280_vm1, %v373_v5  ;;  %v394_v35 = vld [vmem:[%s7976_s11 + $0xb0] sm:$0xff]  ;;  %v395_v36 = vld [vmem:[%s7976_s11 + $0xb8] sm:$0xff] }
  0x1c   : > { %407 = vst.msk [vmem:[#allocation2 + $0x31] sm:$0xff] %vm280_vm1, %v374_v6  ;;  %408 = vst.msk [vmem:[#allocation2 + $0x39] sm:$0xff] %vm280_vm1, %v375_v9  ;;  %v396_v45 = vld [vmem:[%s7976_s11 + $0xc0] sm:$0xff]  ;;  %v397_v46 = vld [vmem:[%s7976_s11 + $0xc8] sm:$0xff] }
  0x1d   : > { %409 = vst.msk [vmem:[#allocation2 + $0x49] sm:$0xff] %vm280_vm1, %v376_v11  ;;  %410 = vst.msk [vmem:[#allocation2 + $0x51] sm:$0xff] %vm280_vm1, %v377_v12  ;;  %v398_v47 = vld [vmem:[%s7976_s11 + $0xd0] sm:$0xff]  ;;  %v399_v48 = vld [vmem:[%s7976_s11 + $0xd8] sm:$0xff] }
  0x1e   : > { %411 = vst.msk [vmem:[#allocation2 + $0x61] sm:$0xff] %vm280_vm1, %v378_v13  ;;  %412 = vst.msk [vmem:[#allocation2 + $0x69] sm:$0xff] %vm280_vm1, %v379_v14  ;;  %v400_v49 = vld [vmem:[%s7976_s11 + $0xe0] sm:$0xff]  ;;  %v401_v50 = vld [vmem:[%s7976_s11 + $0xe8] sm:$0xff] }
  0x1f   : > { %413 = vst.msk [vmem:[#allocation2 + $0x79] sm:$0xff] %vm280_vm1, %v380_v15  ;;  %414 = vst.msk [vmem:[#allocation2 + $0x81] sm:$0xff] %vm280_vm1, %v381_v16 }
  0x20   : > { %415 = vst.msk [vmem:[#allocation2 + $0x91] sm:$0xff] %vm280_vm1, %v382_v17  ;;  %416 = vst.msk [vmem:[#allocation2 + $0x99] sm:$0xff] %vm280_vm1, %v383_v18 }
  0x21   : > { %417 = vst.msk [vmem:[#allocation2 + $0xa9] sm:$0xff] %vm280_vm1, %v384_v19  ;;  %418 = vst.msk [vmem:[#allocation2 + $0xb1] sm:$0xff] %vm280_vm1, %v385_v20  ;;  %v437_v20 = vld [vmem:[#allocation2] sm:$0xff] }
  0x22   : > { %419 = vst.msk [vmem:[#allocation2 + $0xc1] sm:$0xff] %vm280_vm1, %v386_v21  ;;  %420 = vst.msk [vmem:[#allocation2 + $0xc9] sm:$0xff] %vm280_vm1, %v387_v22  ;;  %v488_v29 = vld [vmem:[#allocation2 + $0x19] sm:$0xff]  ;;  %v489_v30 = vld [vmem:[#allocation2 + $0x21] sm:$0xff] }
  0x23   : > { %421 = vst.msk [vmem:[#allocation2 + $0xd9] sm:$0xff] %vm280_vm1, %v388_v23  ;;  %422 = vst.msk [vmem:[#allocation2 + $0xe1] sm:$0xff] %vm280_vm1, %v389_v24  ;;  %v490_v31 = vld [vmem:[#allocation2 + $0x31] sm:$0xff]  ;;  %v8023_v32 = vpack.c.bf16 %v489_v30, %v488_v29  ;;  %v491_v34 = vld [vmem:[#allocation2 + $0x39] sm:$0xff]  ;;  %v1060_v30 = vsel %vm584_vm0, %v8036_v38, 0 }
  0x24   : > { %423 = vst.msk [vmem:[#allocation2 + $0xf1] sm:$0xff] %vm280_vm1, %v390_v25  ;;  %424 = vst.msk [vmem:[#allocation2 + $0xf9] sm:$0xff] %vm280_vm1, %v391_v26  ;;  %v8029_v37 = vpack.c.bf16 %v491_v34, %v490_v31  ;;  %v492_v39 = vld [vmem:[#allocation2 + $0x49] sm:$0xff]  ;;  %v493_v40 = vld [vmem:[#allocation2 + $0x51] sm:$0xff] }
  0x25   : > { %425 = vst.msk [vmem:[#allocation2 + $0x109] sm:$0xff] %vm280_vm1, %v392_v27  ;;  %426 = vst.msk [vmem:[#allocation2 + $0x111] sm:$0xff] %vm280_vm1, %v393_v28  ;;  %6661 = vmatmul.mubr.msk.bf16.vlgmr.msra.gmra.mrb[0].mxu0 %vm280_vm1, %v8023_v32  ;;  %v494_v41 = vld [vmem:[#allocation2 + $0x61] sm:$0xff]  ;;  %v495_v42 = vld [vmem:[#allocation2 + $0x69] sm:$0xff]  ;;  %v8044_v43 = vpack.c.bf16 %v493_v40, %v492_v39 }
  0x26   : > { %427 = vst.msk [vmem:[#allocation2 + $0x121] sm:$0xff] %vm280_vm1, %v394_v35  ;;  %428 = vst.msk [vmem:[#allocation2 + $0x129] sm:$0xff] %vm280_vm1, %v395_v36  ;;  %6693 = vmatpush3.bf16.msra.mxu0 %v798_v33  ;;  %6664 = vmatprep.mubr.msk.bf16.mxu0 %vm280_vm1, %v8029_v37  ;;  %v8046_v44 = vpack.c.bf16 %v495_v42, %v494_v41  ;;  %v496_v51 = vld [vmem:[#allocation2 + $0x79] sm:$0xff]  ;;  %v497_v52 = vld [vmem:[#allocation2 + $0x81] sm:$0xff] }
  0x27   : > { %7784 = vmatprep.subr.msk.bf16.mxu0 %vm584_vm0, %v8036_v38  ;;  %429 = vst.msk [vmem:[#allocation2 + $0x139] sm:$0xff] %vm280_vm1, %v396_v45  ;;  %430 = vst.msk [vmem:[#allocation2 + $0x141] sm:$0xff] %vm280_vm1, %v397_v46  ;;  %v498_v53 = vld [vmem:[#allocation2 + $0x91] sm:$0xff]  ;;  %v499_v54 = vld [vmem:[#allocation2 + $0x99] sm:$0xff]  ;;  %v8064_v55 = vpack.c.bf16 %v497_v52, %v496_v51 }
  0x28   : > { %431 = vst.msk [vmem:[#allocation2 + $0x151] sm:$0xff] %vm280_vm1, %v398_v47  ;;  %432 = vst.msk [vmem:[#allocation2 + $0x159] sm:$0xff] %vm280_vm1, %v399_v48  ;;  %v8066_v56 = vpack.c.bf16 %v499_v54, %v498_v53  ;;  %v500_v57 = vld [vmem:[#allocation2 + $0xa9] sm:$0xff]  ;;  %v501_v58 = vld [vmem:[#allocation2 + $0xb1] sm:$0xff] }
  0x29   : > { %433 = vst.msk [vmem:[#allocation2 + $0x169] sm:$0xff] %vm280_vm1, %v400_v49  ;;  %434 = vst.msk [vmem:[#allocation2 + $0x171] sm:$0xff] %vm280_vm1, %v401_v50  ;;  %v502_v59 = vld [vmem:[#allocation2 + $0xc1] sm:$0xff]  ;;  %v503_v60 = vld [vmem:[#allocation2 + $0xc9] sm:$0xff]  ;;  %v8072_v61 = vpack.c.bf16 %v501_v58, %v500_v57 }
  0x2a   : > { %v8074_v62 = vpack.c.bf16 %v503_v60, %v502_v59  ;;  %v504_v63 = vld [vmem:[#allocation2 + $0xd9] sm:$0xff]  ;;  %v505_v0 = vld [vmem:[#allocation2 + $0xe1] sm:$0xff]  ;;  %v441_v26 = vld [vmem:[#allocation2 + $0x30] sm:$0xff]  ;;  %327 = vst.msk [vmem:[#allocation3] sm:$0xff] %vm326_vm4, %v7817_v2 }
  0x2b   : > { %v506_v1 = vld [vmem:[#allocation2 + $0xf1] sm:$0xff]  ;;  %v507_v3 = vld [vmem:[#allocation2 + $0xf9] sm:$0xff]  ;;  %v8080_v4 = vpack.c.bf16 %v505_v0, %v504_v63  ;;  %v438_v21 = vld [vmem:[#allocation2 + $0x8] sm:$0xff]  ;;  %328 = vst.msk [vmem:[#allocation3 + $0x8] sm:$0xff] %vm326_vm4, %v7817_v2 }
  0x2c   : > { %v8082_v5 = vpack.c.bf16 %v507_v3, %v506_v1  ;;  %v508_v6 = vld [vmem:[#allocation2 + $0x109] sm:$0xff]  ;;  %v509_v7 = vld [vmem:[#allocation2 + $0x111] sm:$0xff]  ;;  %v469_v23 = vpack.c.bf16 %v438_v21, %v437_v20  ;;  %v440_v25 = vld [vmem:[#allocation2 + $0x20] sm:$0xff]  ;;  %332 = vst.msk [vmem:[#allocation3 + $0x198] sm:$0xff] %vm326_vm4, %v7817_v2 }
  0x2d   : > { %6665 = vmatmul.mubr.msk.bf16.gmra.mrb[4].mxu0 %vm280_vm1, %v8044_v43  ;;  %v510_v8 = vld [vmem:[#allocation2 + $0x121] sm:$0xff]  ;;  %v511_v9 = vld [vmem:[#allocation2 + $0x129] sm:$0xff]  ;;  %v8088_v10 = vpack.c.bf16 %v509_v7, %v508_v6  ;;  %v439_v24 = vld [vmem:[#allocation2 + $0x18] sm:$0xff]  ;;  %333 = vst.msk [vmem:[#allocation3 + $0x1a0] sm:$0xff] %vm326_vm4, %v7817_v2 }
  0x2e   : > { %6668 = vmatprep.mubr.msk.bf16.mxu0 %vm280_vm1, %v8046_v44  ;;  %v8090_v11 = vpack.c.bf16 %v511_v9, %v510_v8  ;;  %v512_v12 = vld [vmem:[#allocation2 + $0x139] sm:$0xff]  ;;  %v513_v13 = vld [vmem:[#allocation2 + $0x141] sm:$0xff]  ;;  %v8109_v28 = vpack.c.bf16 %v440_v25, %v439_v24  ;;  %v444_v34 = vld [vmem:[#allocation2 + $0x50] sm:$0xff]  ;;  %336 = vst.msk [vmem:[#allocation3] sm:$0x1] %vm335_vm5, %v7817_v2 }
  0x2f   : > { %v514_v14 = vld [vmem:[#allocation2 + $0x151] sm:$0xff]  ;;  %v515_v15 = vld [vmem:[#allocation2 + $0x159] sm:$0xff]  ;;  %v8096_v16 = vpack.c.bf16 %v513_v13, %v512_v12  ;;  %v8118_v31 = vld [vmem:[%s9148_s1 + $0x6] sm:$0x3]  ;;  %337 = vst.msk [vmem:[#allocation3 + $0x18] sm:$0x1] %vm335_vm5, %v7817_v2 }
  0x30   : > { %v8098_v17 = vpack.c.bf16 %v515_v15, %v514_v14  ;;  %v516_v18 = vld [vmem:[#allocation2 + $0x169] sm:$0xff]  ;;  %v517_v19 = vld [vmem:[#allocation2 + $0x171] sm:$0xff]  ;;  %v445_v35 = vld [vmem:[#allocation2 + $0x60] sm:$0xff]  ;;  %338 = vst.msk [vmem:[#allocation3 + $0x30] sm:$0x1] %vm335_vm5, %v7817_v2 }
  0x31   : > { %v8104_v22 = vpack.c.bf16 %v517_v19, %v516_v18  ;;  %v442_v27 = vld [vmem:[#allocation2 + $0x38] sm:$0xff]  ;;  %v443_v33 = vld [vmem:[#allocation2 + $0x48] sm:$0xff]  ;;  %v448_v41 = vld [vmem:[#allocation2 + $0x80] sm:$0xff]  ;;  %339 = vst.msk [vmem:[#allocation3 + $0x48] sm:$0x1] %vm335_vm5, %v7817_v2 }
  0x32   : > { %v8111_v29 = vpack.c.bf16 %v442_v27, %v441_v26  ;;  %v446_v36 = vld [vmem:[#allocation2 + $0x68] sm:$0xff]  ;;  %v8126_v38 = vpack.c.bf16 %v444_v34, %v443_v33  ;;  %v447_v40 = vld [vmem:[#allocation2 + $0x78] sm:$0xff]  ;;  %v449_v42 = vld [vmem:[#allocation2 + $0x90] sm:$0xff]  ;;  %340 = vst.msk [vmem:[#allocation3 + $0x60] sm:$0x1] %vm335_vm5, %v7817_v2 }
  0x33   : > { %v8128_v39 = vpack.c.bf16 %v446_v36, %v445_v35  ;;  %v450_v45 = vld [vmem:[#allocation2 + $0x98] sm:$0xff]  ;;  %v8134_v46 = vpack.c.bf16 %v448_v41, %v447_v40  ;;  %v451_v48 = vld [vmem:[#allocation2 + $0xa8] sm:$0xff]  ;;  %v452_v49 = vld [vmem:[#allocation2 + $0xb0] sm:$0xff]  ;;  %v1354_v41 = vsel %vm584_vm0, %v8118_v31, 0  ;;  %341 = vst.msk [vmem:[#allocation3 + $0x78] sm:$0x1] %vm335_vm5, %v7817_v2 }
  0x34   : > { %v8136_v47 = vpack.c.bf16 %v450_v45, %v449_v42  ;;  %v453_v50 = vld [vmem:[#allocation2 + $0xc0] sm:$0xff]  ;;  %v454_v51 = vld [vmem:[#allocation2 + $0xc8] sm:$0xff]  ;;  %v8142_v52 = vpack.c.bf16 %v452_v49, %v451_v48  ;;  %v455_v54 = vld [vmem:[#allocation2 + $0xd8] sm:$0xff]  ;;  %342 = vst.msk [vmem:[#allocation3 + $0x90] sm:$0x1] %vm335_vm5, %v7817_v2 }
  0x35   : > { %6669 = vmatmul.mubr.msk.bf16.gmra.mrb[8].mxu0 %vm280_vm1, %v8064_v55  ;;  %v8144_v53 = vpack.c.bf16 %v454_v51, %v453_v50  ;;  %v456_v57 = vld [vmem:[#allocation2 + $0xe0] sm:$0xff]  ;;  %v457_v58 = vld [vmem:[#allocation2 + $0xf0] sm:$0xff]  ;;  %v458_v59 = vld [vmem:[#allocation2 + $0xf8] sm:$0xff]  ;;  %343 = vst.msk [vmem:[#allocation3 + $0xa8] sm:$0x1] %vm335_vm5, %v7817_v2 }
  0x36   : > { %6672 = vmatprep.mubr.msk.bf16.mxu0 %vm280_vm1, %v8066_v56  ;;  %v8150_v60 = vpack.c.bf16 %v456_v57, %v455_v54  ;;  %v8152_v63 = vpack.c.bf16 %v458_v59, %v457_v58  ;;  %v459_v0 = vld [vmem:[#allocation2 + $0x108] sm:$0xff]  ;;  %v460_v1 = vld [vmem:[#allocation2 + $0x110] sm:$0xff]  ;;  %v461_v3 = vld [vmem:[#allocation2 + $0x120] sm:$0xff]  ;;  %344 = vst.msk [vmem:[#allocation3 + $0xc0] sm:$0x1] %vm335_vm5, %v7817_v2 }
  0x37   : > { %v462_v6 = vld [vmem:[#allocation2 + $0x128] sm:$0xff]  ;;  %v8158_v7 = vpack.c.bf16 %v460_v1, %v459_v0  ;;  %v463_v9 = vld [vmem:[#allocation2 + $0x138] sm:$0xff]  ;;  %v464_v12 = vld [vmem:[#allocation2 + $0x140] sm:$0xff]  ;;  %345 = vst.msk [vmem:[#allocation3 + $0xd8] sm:$0x1] %vm335_vm5, %v7817_v2 }
  0x38   : > { %v8160_v8 = vpack.c.bf16 %v462_v6, %v461_v3  ;;  %v465_v13 = vld [vmem:[#allocation2 + $0x150] sm:$0xff]  ;;  %v466_v14 = vld [vmem:[#allocation2 + $0x158] sm:$0xff]  ;;  %v8166_v15 = vpack.c.bf16 %v464_v12, %v463_v9  ;;  %v467_v21 = vld [vmem:[#allocation2 + $0x168] sm:$0xff]  ;;  %346 = vst.msk [vmem:[#allocation3 + $0xf0] sm:$0x1] %vm335_vm5, %v7817_v2 }
  0x39   : > { %v8168_v18 = vpack.c.bf16 %v466_v14, %v465_v13  ;;  %v402_v19 = vld [vmem:[%s7976_s11 + $0xf0] sm:$0xff]  ;;  %v403_v20 = vld [vmem:[%s7976_s11 + $0xf8] sm:$0xff]  ;;  %v961_v24 = vld [vmem:[#allocation2 + $0x2] sm:$0xff]  ;;  %347 = vst.msk [vmem:[#allocation3 + $0x108] sm:$0x1] %vm335_vm5, %v7817_v2 }
  0x3a   : > { %435 = vst.msk [vmem:[#allocation2 + $0x181] sm:$0xff] %vm280_vm1, %v402_v19  ;;  %436 = vst.msk [vmem:[#allocation2 + $0x189] sm:$0xff] %vm280_vm1, %v403_v20  ;;  %v962_v25 = vld [vmem:[#allocation2 + $0xa] sm:$0xff]  ;;  %v964_v33 = vld [vmem:[#allocation2 + $0x22] sm:$0xff] }
  0x3b   : > { %v993_v27 = vpack.c.bf16 %v962_v25, %v961_v24  ;;  %v965_v34 = vld [vmem:[#allocation2 + $0x32] sm:$0xff]  ;;  %v966_v35 = vld [vmem:[#allocation2 + $0x3a] sm:$0xff]  ;;  %v6090_v42 = vld [vmem:[%s9148_s1 + $0x8] sm:$0x3]  ;;  %348 = vst.msk [vmem:[#allocation3 + $0x120] sm:$0x1] %vm335_vm5, %v7817_v2 }
  0x3c   : > { %v8185_v40 = vpack.c.bf16 %v966_v35, %v965_v34  ;;  %v967_v45 = vld [vmem:[#allocation2 + $0x4a] sm:$0xff]  ;;  %v968_v48 = vld [vmem:[#allocation2 + $0x52] sm:$0xff]  ;;  %v969_v49 = vld [vmem:[#allocation2 + $0x62] sm:$0xff]  ;;  %349 = vst.msk [vmem:[#allocation3 + $0x138] sm:$0x1] %vm335_vm5, %v7817_v2 }
  0x3d   : > { %6673 = vmatmul.mubr.msk.bf16.gmra.mrb[12].mxu0 %vm280_vm1, %v8072_v61  ;;  %v970_v50 = vld [vmem:[#allocation2 + $0x6a] sm:$0xff]  ;;  %v8197_v51 = vpack.c.bf16 %v968_v48, %v967_v45  ;;  %v971_v54 = vld [vmem:[#allocation2 + $0x7a] sm:$0xff]  ;;  %v972_v57 = vld [vmem:[#allocation2 + $0x82] sm:$0xff]  ;;  %350 = vst.msk [vmem:[#allocation3 + $0x150] sm:$0x1] %vm335_vm5, %v7817_v2 }
  0x3e   : > { %6676 = vmatprep.mubr.msk.bf16.mxu0 %vm280_vm1, %v8074_v62  ;;  %v973_v58 = vld [vmem:[#allocation2 + $0x92] sm:$0xff]  ;;  %v974_v59 = vld [vmem:[#allocation2 + $0x9a] sm:$0xff]  ;;  %v8205_v0 = vpack.c.bf16 %v972_v57, %v971_v54  ;;  %v975_v3 = vld [vmem:[#allocation2 + $0xaa] sm:$0xff]  ;;  %351 = vst.msk [vmem:[#allocation3 + $0x168] sm:$0x1] %vm335_vm5, %v7817_v2 }
  0x3f   : > { %v8207_v1 = vpack.c.bf16 %v974_v59, %v973_v58  ;;  %v976_v6 = vld [vmem:[#allocation2 + $0xb2] sm:$0xff]  ;;  %v977_v9 = vld [vmem:[#allocation2 + $0xc2] sm:$0xff]  ;;  %v978_v12 = vld [vmem:[#allocation2 + $0xca] sm:$0xff]  ;;  %352 = vst.msk [vmem:[#allocation3 + $0x180] sm:$0x1] %vm335_vm5, %v7817_v2 }
  0x40   : > { %v8213_v13 = vpack.c.bf16 %v976_v6, %v975_v3  ;;  %v8215_v14 = vpack.c.bf16 %v978_v12, %v977_v9  ;;  %v979_v19 = vld [vmem:[#allocation2 + $0xda] sm:$0xff]  ;;  %v980_v20 = vld [vmem:[#allocation2 + $0xe2] sm:$0xff]  ;;  %v986_v34 = vld [vmem:[#allocation2 + $0x12a] sm:$0xff]  ;;  %v1648_v6 = vsel %vm584_vm0, %v6090_v42, 0  ;;  %353 = vst.msk [vmem:[#allocation3 + $0x198] sm:$0x1] %vm335_vm5, %v7817_v2 }
  0x41   : > { %v8221_v24 = vpack.c.bf16 %v980_v20, %v979_v19  ;;  %v987_v45 = vld [vmem:[#allocation2 + $0x13a] sm:$0xff]  ;;  %v988_v48 = vld [vmem:[#allocation2 + $0x142] sm:$0xff]  ;;  %v991_v58 = vld [vmem:[#allocation2 + $0x16a] sm:$0xff]  ;;  %355 = vst.msk [vmem:[#allocation3 + $0x29] sm:$0x1] %vm335_vm5, %v7817_v2 }
  0x42   : > { %v8237_v54 = vpack.c.bf16 %v988_v48, %v987_v45  ;;  %v992_v59 = vld [vmem:[#allocation2 + $0x172] sm:$0xff]  ;;  %v6107_v9 = vld [vmem:[%s9148_s1 + $0xa] sm:$0x3]  ;;  %v6124_v20 = vld [vmem:[%s9148_s1 + $0xc] sm:$0x3] }
  0x43   : > { %v8245_v3 = vpack.c.bf16 %v992_v59, %v991_v58  ;;  %v1942_v19 = vsel %vm584_vm0, %v6107_v9, 0  ;;  %356 = vst.msk [vmem:[#allocation3 + $0x41] sm:$0x1] %vm335_vm5, %v7817_v2  ;;  %357 = vst.msk [vmem:[#allocation3 + $0x59] sm:$0x1] %vm335_vm5, %v7817_v2 }
  0x44   : > { %358 = vst.msk [vmem:[#allocation3 + $0x71] sm:$0x1] %vm335_vm5, %v7817_v2  ;;  %359 = vst.msk [vmem:[#allocation3 + $0x89] sm:$0x1] %vm335_vm5, %v7817_v2 }
  0x45   : > { %6677 = vmatmul.mubr.msk.bf16.gmra.mrb[16].mxu0 %vm280_vm1, %v8080_v4  ;;  %360 = vst.msk [vmem:[#allocation3 + $0xa1] sm:$0x1] %vm335_vm5, %v7817_v2  ;;  %361 = vst.msk [vmem:[#allocation3 + $0xb9] sm:$0x1] %vm335_vm5, %v7817_v2 }
  0x46   : > { %6680 = vmatprep.mubr.msk.bf16.mxu0 %vm280_vm1, %v8082_v5  ;;  %362 = vst.msk [vmem:[#allocation3 + $0xd1] sm:$0x1] %vm335_vm5, %v7817_v2  ;;  %363 = vst.msk [vmem:[#allocation3 + $0xe9] sm:$0x1] %vm335_vm5, %v7817_v2 }
  0x47   : > { %364 = vst.msk [vmem:[#allocation3 + $0x101] sm:$0x1] %vm335_vm5, %v7817_v2  ;;  %365 = vst.msk [vmem:[#allocation3 + $0x119] sm:$0x1] %vm335_vm5, %v7817_v2 }
  0x48   : > { %366 = vst.msk [vmem:[#allocation3 + $0x131] sm:$0x1] %vm335_vm5, %v7817_v2  ;;  %367 = vst.msk [vmem:[#allocation3 + $0x149] sm:$0x1] %vm335_vm5, %v7817_v2 }
  0x49   : > { %368 = vst.msk [vmem:[#allocation3 + $0x161] sm:$0x1] %vm335_vm5, %v7817_v2  ;;  %369 = vst.msk [vmem:[#allocation3 + $0x179] sm:$0x1] %vm335_vm5, %v7817_v2 }
  0x4a   : > { %370 = vst.msk [vmem:[#allocation3 + $0x191] sm:$0x1] %vm335_vm5, %v7817_v2 }
  0x4b   : > { %330 = vst.msk [vmem:[#allocation3 + $0x10] sm:$0x3] %vm329_vm6, %v7817_v2  ;;  %334 = vst.msk [vmem:[#allocation3 + $0x1a8] sm:$0x3] %vm329_vm6, %v7817_v2 }
  0x4c   : > { %354 = vst.msk [vmem:[#allocation3 + $0x11] sm:$0x1] %vm335_vm5, %v7817_v2  ;;  %371 = vst.msk [vmem:[#allocation3 + $0x1a9] sm:$0x1] %vm335_vm5, %v7817_v2  ;;  %v8557_v2 = vld [vmem:[%s9149_s2] ss:$0 sm:$0xff] }
  0x4d   : > { %6681 = vmatmul.mubr.msk.bf16.gmra.mrb[20].mxu0 %vm280_vm1, %v8088_v10 }
  0x4e   : > { %6684 = vmatprep.mubr.msk.bf16.mxu0 %vm280_vm1, %v8090_v11 }
  0x55   : > { %6685 = vmatmul.mubr.msk.bf16.gmra.mrb[24].mxu0 %vm280_vm1, %v8096_v16 }
  0x56   : > { %6688 = vmatprep.mubr.msk.bf16.mxu0 %vm280_vm1, %v8098_v17 }
  0x5d   : > { %6689 = vmatmul.mubr.msk.bf16.gmra.mrb[28].mxu0 %vm280_vm1, %v8104_v22 }
  0x5e   : > { %6694 = vmatprep.mubr.msk.bf16.mxu0 %vm280_vm1, %v469_v23  ;;  %v468_v23 = vld [vmem:[#allocation2 + $0x170] sm:$0xff] }
  0x5f   : > { %v8178_v26 = vpack.c.bf16 %v468_v23, %v467_v21  ;;  %v981_v21 = vld [vmem:[#allocation2 + $0xf2] sm:$0xff]  ;;  %v982_v23 = vld [vmem:[#allocation2 + $0xfa] sm:$0xff] }
  0x60   : > { %v8223_v25 = vpack.c.bf16 %v982_v23, %v981_v21  ;;  %v6141_v21 = vld [vmem:[%s9148_s1 + $0xe] sm:$0x3] }
  0x61   : > { %v1874_v23 = vld [vmem:[#allocation2 + $0x18a] sm:$0xff] }
  0x65   : > { %6695 = vmatmul.mubr.msk.bf16.vlgmr.msra.gmra.mrb[0].mxu0 %vm280_vm1, %v8109_v28 }
  0x66   : > { %6727 = vmatpush3.bf16.msra.mxu0 %v1060_v30  ;;  %6698 = vmatprep.mubr.msk.bf16.mxu0 %vm280_vm1, %v8111_v29  ;;  %v963_v30 = vld [vmem:[#allocation2 + $0x1a] sm:$0xff] }
  0x67   : > { %7785 = vmatprep.subr.msk.bf16.mxu0 %vm584_vm0, %v8118_v31  ;;  %v8183_v36 = vpack.c.bf16 %v964_v33, %v963_v30  ;;  %v8199_v31 = vpack.c.bf16 %v970_v50, %v969_v49  ;;  %v984_v30 = vld [vmem:[#allocation2 + $0x112] sm:$0xff]  ;;  %v985_v33 = vld [vmem:[#allocation2 + $0x122] sm:$0xff]  ;;  %v990_v50 = vld [vmem:[#allocation2 + $0x15a] sm:$0xff] }
  0x68   : > { %v989_v49 = vld [vmem:[#allocation2 + $0x152] sm:$0xff] }
  0x69   : > { %v8239_v57 = vpack.c.bf16 %v990_v50, %v989_v49 }
  0x6d   : > { %6699 = vmatmul.mubr.msk.bf16.gmra.mrb[4].mxu0 %vm280_vm1, %v8126_v38 }
  0x6e   : > { %6702 = vmatprep.mubr.msk.bf16.mxu0 %vm280_vm1, %v8128_v39 }
  0x75   : > { %6703 = vmatmul.mubr.msk.bf16.gmra.mrb[8].mxu0 %vm280_vm1, %v8134_v46 }
  0x76   : > { %6706 = vmatprep.mubr.msk.bf16.mxu0 %vm280_vm1, %v8136_v47 }
  0x7d   : > { %6707 = vmatmul.mubr.msk.bf16.gmra.mrb[12].mxu0 %vm280_vm1, %v8142_v52 }
  0x7e   : > { %6710 = vmatprep.mubr.msk.bf16.mxu0 %vm280_vm1, %v8144_v53 }
  0x85   : > { %6711 = vmatmul.mubr.msk.bf16.gmra.mrb[16].mxu0 %vm280_vm1, %v8150_v60 }
  0x86   : > { %6714 = vmatprep.mubr.msk.bf16.mxu0 %vm280_vm1, %v8152_v63 }
  0x8d   : > { %6715 = vmatmul.mubr.msk.bf16.gmra.mrb[20].mxu0 %vm280_vm1, %v8158_v7 }
  0x8e   : > { %6718 = vmatprep.mubr.msk.bf16.mxu0 %vm280_vm1, %v8160_v8 }
  0x95   : > { %6719 = vmatmul.mubr.msk.bf16.gmra.mrb[24].mxu0 %vm280_vm1, %v8166_v15 }
  0x96   : > { %6722 = vmatprep.mubr.msk.bf16.mxu0 %vm280_vm1, %v8168_v18 }
  0x9d   : > { %6723 = vmatmul.mubr.msk.bf16.gmra.mrb[28].mxu0 %vm280_vm1, %v8178_v26 }
  0x9e   : > { %6728 = vmatprep.mubr.msk.bf16.mxu0 %vm280_vm1, %v993_v27  ;;  %v983_v27 = vld [vmem:[#allocation2 + $0x10a] sm:$0xff] }
  0x9f   : > { %v8229_v35 = vpack.c.bf16 %v984_v30, %v983_v27  ;;  %v2531_v30 = vsel %vm584_vm0, %v6141_v21, 0 }
  0xa5   : > { %6729 = vmatmul.mubr.msk.bf16.vlgmr.msra.gmra.mrb[0].mxu0 %vm280_vm1, %v8183_v36 }
  0xa6   : > { %6761 = vmatpush3.bf16.msra.mxu0 %v1354_v41  ;;  %6732 = vmatprep.mubr.msk.bf16.mxu0 %vm280_vm1, %v8185_v40  ;;  %v8231_v41 = vpack.c.bf16 %v986_v34, %v985_v33  ;;  %v6158_v33 = vld [vmem:[%s9148_s1 + $0x10] sm:$0x3] }
  0xa7   : > { %7786 = vmatprep.subr.msk.bf16.mxu0 %vm584_vm0, %v6090_v42  ;;  %v1286_v42 = vld [vmem:[#allocation2 + $0x188] sm:$0xff] }
  0xad   : > { %6733 = vmatmul.mubr.msk.bf16.gmra.mrb[4].mxu0 %vm280_vm1, %v8197_v51 }
  0xae   : > { %6736 = vmatprep.mubr.msk.bf16.mxu0 %vm280_vm1, %v8199_v31 }
  0xb5   : > { %6737 = vmatmul.mubr.msk.bf16.gmra.mrb[8].mxu0 %vm280_vm1, %v8205_v0 }
  0xb6   : > { %6740 = vmatprep.mubr.msk.bf16.mxu0 %vm280_vm1, %v8207_v1 }
  0xbd   : > { %6741 = vmatmul.mubr.msk.bf16.gmra.mrb[12].mxu0 %vm280_vm1, %v8213_v13 }
  0xbe   : > { %6744 = vmatprep.mubr.msk.bf16.mxu0 %vm280_vm1, %v8215_v14 }
  0xc5   : > { %6745 = vmatmul.mubr.msk.bf16.gmra.mrb[16].mxu0 %vm280_vm1, %v8221_v24 }
  0xc6   : > { %6748 = vmatprep.mubr.msk.bf16.mxu0 %vm280_vm1, %v8223_v25 }
  0xcd   : > { %6749 = vmatmul.mubr.msk.bf16.gmra.mrb[20].mxu0 %vm280_vm1, %v8229_v35 }
  0xce   : > { %6752 = vmatprep.mubr.msk.bf16.mxu0 %vm280_vm1, %v8231_v41 }
  0xd5   : > { %6753 = vmatmul.mubr.msk.bf16.gmra.mrb[24].mxu0 %vm280_vm1, %v8237_v54 }
  0xd6   : > { %6756 = vmatprep.mubr.msk.bf16.mxu0 %vm280_vm1, %v8239_v57 }
  0xdd   : > { %6757 = vmatmul.mubr.msk.bf16.gmra.mrb[28].mxu0 %vm280_vm1, %v8245_v3 }
  0xde   : > { %6762 = vmatprep.mubr.msk.bf16.mxu0 %vm280_vm1, %v8109_v28  ;;  %v1285_v28 = vld [vmem:[#allocation2 + $0x180] sm:$0xff] }
  0xdf   : > { %v8284_v12 = vpack.c.bf16 %v1286_v42, %v1285_v28 }
  0xe5   : > { %6763 = vmatmul.mubr.msk.bf16.vlgmr.msra.gmra.mrb[0].mxu0 %vm280_vm1, %v8111_v29 }
  0xe6   : > { %6795 = vmatpush3.bf16.msra.mxu0 %v1648_v6  ;;  %6766 = vmatprep.mubr.msk.bf16.mxu0 %vm280_vm1, %v8126_v38 }
  0xe7   : > { %7787 = vmatprep.subr.msk.bf16.mxu0 %vm584_vm0, %v6107_v9 }
  0xed   : > { %6767 = vmatmul.mubr.msk.bf16.gmra.mrb[4].mxu0 %vm280_vm1, %v8128_v39 }
  0xee   : > { %6770 = vmatprep.mubr.msk.bf16.mxu0 %vm280_vm1, %v8134_v46 }
  0xf5   : > { %6771 = vmatmul.mubr.msk.bf16.gmra.mrb[8].mxu0 %vm280_vm1, %v8136_v47 }
  0xf6   : > { %6774 = vmatprep.mubr.msk.bf16.mxu0 %vm280_vm1, %v8142_v52 }
  0xfd   : > { %6775 = vmatmul.mubr.msk.bf16.gmra.mrb[12].mxu0 %vm280_vm1, %v8144_v53 }
  0xfe   : > { %6778 = vmatprep.mubr.msk.bf16.mxu0 %vm280_vm1, %v8150_v60 }
 0x105   : > { %6779 = vmatmul.mubr.msk.bf16.gmra.mrb[16].mxu0 %vm280_vm1, %v8152_v63 }
 0x106   : > { %6782 = vmatprep.mubr.msk.bf16.mxu0 %vm280_vm1, %v8158_v7 }
 0x10d   : > { %6783 = vmatmul.mubr.msk.bf16.gmra.mrb[20].mxu0 %vm280_vm1, %v8160_v8 }
 0x10e   : > { %6786 = vmatprep.mubr.msk.bf16.mxu0 %vm280_vm1, %v8166_v15 }
 0x115   : > { %6787 = vmatmul.mubr.msk.bf16.gmra.mrb[24].mxu0 %vm280_vm1, %v8168_v18 }
 0x116   : > { %6790 = vmatprep.mubr.msk.bf16.mxu0 %vm280_vm1, %v8178_v26 }
 0x11d   : > { %6791 = vmatmul.mubr.msk.bf16.gmra.mrb[28].mxu0 %vm280_vm1, %v8284_v12 }
 0x11e   : > { %6796 = vmatprep.mubr.msk.bf16.mxu0 %vm280_vm1, %v8023_v32  ;;  %v1579_v32 = vld [vmem:[#allocation2 + $0x181] sm:$0xff] }
 0x125   : > { %6797 = vmatmul.mubr.msk.bf16.vlgmr.msra.gmra.mrb[0].mxu0 %vm280_vm1, %v8029_v37  ;;  %v1580_v37 = vld [vmem:[#allocation2 + $0x189] sm:$0xff] }
 0x126   : > { %6829 = vmatpush3.bf16.msra.mxu0 %v1942_v19  ;;  %6800 = vmatprep.mubr.msk.bf16.mxu0 %vm280_vm1, %v8044_v43  ;;  %v8323_v43 = vpack.c.bf16 %v1580_v37, %v1579_v32 }
 0x127   : > { %7788 = vmatprep.subr.msk.bf16.mxu0 %vm584_vm0, %v6124_v20 }
 0x12d   : > { %6801 = vmatmul.mubr.msk.bf16.gmra.mrb[4].mxu0 %vm280_vm1, %v8046_v44  ;;  %v2237_v44 = vsel %vm584_vm0, %v6124_v20, 0 }
 0x12e   : > { %6804 = vmatprep.mubr.msk.bf16.mxu0 %vm280_vm1, %v8064_v55 }
 0x135   : > { %6805 = vmatmul.mubr.msk.bf16.gmra.mrb[8].mxu0 %vm280_vm1, %v8066_v56 }
 0x136   : > { %6808 = vmatprep.mubr.msk.bf16.mxu0 %vm280_vm1, %v8072_v61 }
 0x13d   : > { %6809 = vmatmul.mubr.msk.bf16.gmra.mrb[12].mxu0 %vm280_vm1, %v8074_v62 }
 0x13e   : > { %6812 = vmatprep.mubr.msk.bf16.mxu0 %vm280_vm1, %v8080_v4 }
 0x145   : > { %6813 = vmatmul.mubr.msk.bf16.gmra.mrb[16].mxu0 %vm280_vm1, %v8082_v5 }
 0x146   : > { %6816 = vmatprep.mubr.msk.bf16.mxu0 %vm280_vm1, %v8088_v10 }
 0x14d   : > { %6817 = vmatmul.mubr.msk.bf16.gmra.mrb[20].mxu0 %vm280_vm1, %v8090_v11 }
 0x14e   : > { %6820 = vmatprep.mubr.msk.bf16.mxu0 %vm280_vm1, %v8096_v16 }
 0x155   : > { %6821 = vmatmul.mubr.msk.bf16.gmra.mrb[24].mxu0 %vm280_vm1, %v8098_v17 }
 0x156   : > { %6824 = vmatprep.mubr.msk.bf16.mxu0 %vm280_vm1, %v8104_v22 }
 0x15d   : > { %6825 = vmatmul.mubr.msk.bf16.gmra.mrb[28].mxu0 %vm280_vm1, %v8323_v43 }
 0x15e   : > { %6830 = vmatprep.mubr.msk.bf16.mxu0 %vm280_vm1, %v8183_v36  ;;  %v1873_v36 = vld [vmem:[#allocation2 + $0x182] sm:$0xff] }
 0x15f   : > { %v8362_v27 = vpack.c.bf16 %v1874_v23, %v1873_v36 }
 0x165   : > { %6831 = vmatmul.mubr.msk.bf16.vlgmr.msra.gmra.mrb[0].mxu0 %vm280_vm1, %v8185_v40 }
 0x166   : > { %6863 = vmatpush3.bf16.msra.mxu0 %v2237_v44  ;;  %6834 = vmatprep.mubr.msk.bf16.mxu0 %vm280_vm1, %v8197_v51 }
 0x167   : > { %7789 = vmatprep.subr.msk.bf16.mxu0 %vm584_vm0, %v6141_v21 }
 0x16d   : > { %6835 = vmatmul.mubr.msk.bf16.gmra.mrb[4].mxu0 %vm280_vm1, %v8199_v31 }
 0x16e   : > { %6838 = vmatprep.mubr.msk.bf16.mxu0 %vm280_vm1, %v8205_v0 }
 0x175   : > { %6839 = vmatmul.mubr.msk.bf16.gmra.mrb[8].mxu0 %vm280_vm1, %v8207_v1 }
 0x176   : > { %6842 = vmatprep.mubr.msk.bf16.mxu0 %vm280_vm1, %v8213_v13 }
 0x17d   : > { %6843 = vmatmul.mubr.msk.bf16.gmra.mrb[12].mxu0 %vm280_vm1, %v8215_v14 }
 0x17e   : > { %6846 = vmatprep.mubr.msk.bf16.mxu0 %vm280_vm1, %v8221_v24 }
 0x185   : > { %6847 = vmatmul.mubr.msk.bf16.gmra.mrb[16].mxu0 %vm280_vm1, %v8223_v25 }
 0x186   : > { %6850 = vmatprep.mubr.msk.bf16.mxu0 %vm280_vm1, %v8229_v35 }
 0x18d   : > { %6851 = vmatmul.mubr.msk.bf16.gmra.mrb[20].mxu0 %vm280_vm1, %v8231_v41 }
 0x18e   : > { %6854 = vmatprep.mubr.msk.bf16.mxu0 %vm280_vm1, %v8237_v54 }
 0x195   : > { %6855 = vmatmul.mubr.msk.bf16.gmra.mrb[24].mxu0 %vm280_vm1, %v8239_v57 }
 0x196   : > { %6858 = vmatprep.mubr.msk.bf16.mxu0 %vm280_vm1, %v8245_v3 }
 0x19d   : > { %6859 = vmatmul.mubr.msk.bf16.gmra.mrb[28].mxu0 %vm280_vm1, %v8362_v27 }
 0x19e   : > { %6864 = vmatprep.mubr.msk.bf16.mxu0 %vm280_vm1, %v8111_v29  ;;  %v2168_v29 = vld [vmem:[#allocation2 + $0x198] sm:$0xff] }
 0x1a5   : > { %6865 = vmatmul.mubr.msk.bf16.vlgmr.msra.gmra.mrb[0].mxu0 %vm280_vm1, %v8126_v38  ;;  %v2169_v38 = vld [vmem:[#allocation2 + $0x1a0] sm:$0xff] }
 0x1a6   : > { %6897 = vmatpush3.bf16.msra.mxu0 %v2531_v30  ;;  %6868 = vmatprep.mubr.msk.bf16.mxu0 %vm280_vm1, %v8128_v39  ;;  %v2432_v39 = vld [vmem:[#allocation2 + $0x31] sm:$0xff] }
 0x1a7   : > { %7790 = vmatprep.subr.msk.bf16.mxu0 %vm584_vm0, %v6158_v33 }
 0x1ad   : > { %6869 = vmatmul.mubr.msk.bf16.gmra.mrb[4].mxu0 %vm280_vm1, %v8134_v46  ;;  %v2433_v46 = vld [vmem:[#allocation2 + $0x39] sm:$0xff] }
 0x1ae   : > { %6872 = vmatprep.mubr.msk.bf16.mxu0 %vm280_vm1, %v8136_v47  ;;  %v2185_v47 = vpack.c.bf16 %v2169_v38, %v2168_v29 }
 0x1b5   : > { %6873 = vmatmul.mubr.msk.bf16.gmra.mrb[8].mxu0 %vm280_vm1, %v8142_v52  ;;  %v2464_v52 = vpack.c.bf16 %v2433_v46, %v2432_v39 }
 0x1b6   : > { %6876 = vmatprep.mubr.msk.bf16.mxu0 %vm280_vm1, %v8144_v53  ;;  %v2434_v53 = vld [vmem:[#allocation2 + $0x49] sm:$0xff] }
 0x1bd   : > { %6877 = vmatmul.mubr.msk.bf16.gmra.mrb[12].mxu0 %vm280_vm1, %v8150_v60  ;;  %v2435_v60 = vld [vmem:[#allocation2 + $0x51] sm:$0xff] }
 0x1be   : > { %6880 = vmatprep.mubr.msk.bf16.mxu0 %vm280_vm1, %v8152_v63  ;;  %v2436_v63 = vld [vmem:[#allocation2 + $0x61] sm:$0xff] }
 0x1c5   : > { %6881 = vmatmul.mubr.msk.bf16.gmra.mrb[16].mxu0 %vm280_vm1, %v8158_v7  ;;  %v2437_v7 = vld [vmem:[#allocation2 + $0x69] sm:$0xff] }
 0x1c6   : > { %6884 = vmatprep.mubr.msk.bf16.mxu0 %vm280_vm1, %v8160_v8  ;;  %v2465_v8 = vpack.c.bf16 %v2435_v60, %v2434_v53 }
 0x1cd   : > { %6885 = vmatmul.mubr.msk.bf16.gmra.mrb[20].mxu0 %vm280_vm1, %v8166_v15  ;;  %v2466_v15 = vpack.c.bf16 %v2437_v7, %v2436_v63 }
 0x1ce   : > { %6888 = vmatprep.mubr.msk.bf16.mxu0 %vm280_vm1, %v8168_v18  ;;  %v2825_v18 = vsel %vm584_vm0, %v6158_v33, 0 }
 0x1d5   : > { %6889 = vmatmul.mubr.msk.bf16.gmra.mrb[24].mxu0 %vm280_vm1, %v8178_v26 }
 0x1d6   : > { %6892 = vmatprep.mubr.msk.bf16.mxu0 %vm280_vm1, %v8284_v12 }
 0x1dd   : > { %6893 = vmatmul.mubr.msk.bf16.gmra.mrb[28].mxu0 %vm280_vm1, %v2185_v47  ;;  %v8595_v47 = vld [vmem:[%s9151_s4 + $0x10] sm:$0xff]  }
 0x1de   : > { %6898 = vmatprep.mubr.msk.bf16.mxu0 %vm280_vm1, %v2464_v52 }
 0x1e5   : > { %6899 = vmatmul.mubr.msk.bf16.vlgmr.msra.gmra.mrb[0].mxu0 %vm280_vm1, %v2465_v8 }
 0x1e6   : > { %6931 = vmatpush3.bf16.msra.mxu0 %v2825_v18  ;;  %6902 = vmatprep.mubr.msk.bf16.mxu0 %vm280_vm1, %v2466_v15 }
 0x1ed   : > { %6903 = vmatmul.mubr.msk.bf16.gmra.mrb[4].mxu0 %vm280_vm1, %v8064_v55  ;;  %v2462_v55 = vld [vmem:[#allocation2 + $0x199] sm:$0xff] }
 0x1ee   : > { %6906 = vmatprep.mubr.msk.bf16.mxu0 %vm280_vm1, %v8066_v56  ;;  %v2463_v56 = vld [vmem:[#allocation2 + $0x1a1] sm:$0xff] }
 0x1f5   : > { %6907 = vmatmul.mubr.msk.bf16.gmra.mrb[8].mxu0 %vm280_vm1, %v8072_v61  ;;  %v2479_v61 = vpack.c.bf16 %v2463_v56, %v2462_v55 }
 0x1f6   : > { %6910 = vmatprep.mubr.msk.bf16.mxu0 %vm280_vm1, %v8074_v62  ;;  %v2756_v62 = vld [vmem:[#allocation2 + $0x19a] sm:$0xff] }
 0x1fd   : > { %6911 = vmatmul.mubr.msk.bf16.gmra.mrb[12].mxu0 %vm280_vm1, %v8080_v4  ;;  %v2757_v4 = vld [vmem:[#allocation2 + $0x1a2] sm:$0xff] }
 0x1fe   : > { %6914 = vmatprep.mubr.msk.bf16.mxu0 %vm280_vm1, %v8082_v5  ;;  %v2773_v5 = vpack.c.bf16 %v2757_v4, %v2756_v62 }
 0x205   : > { %6915 = vmatmul.mubr.msk.bf16.gmra.mrb[16].mxu0 %vm280_vm1, %v8088_v10  ;;  %v7800_v10 = vld [vmem:[%s9151_s4 + $0x8] sm:$0xff]  }
 0x206   : > { %6918 = vmatprep.mubr.msk.bf16.mxu0 %vm280_vm1, %v8090_v11  ;;  %6964 = vmatprep.subr.bf16.mxu1 %v7800_v10  ;;  %v3213_v11 = vld [vmem:[#allocation3 + $0x1] sm:$0xff] }
 0x207   : > { %6965 = vmatpush3.bf16.msra.mxu1 %v7800_v10 }
 0x20d   : > { %6919 = vmatmul.mubr.msk.bf16.gmra.mrb[20].mxu0 %vm280_vm1, %v8096_v16  ;;  %v3214_v16 = vld [vmem:[#allocation3 + $0x9] sm:$0xff] }
 0x20e   : > { %6922 = vmatprep.mubr.msk.bf16.mxu0 %vm280_vm1, %v8098_v17  ;;  %v3245_v17 = vpack.c.bf16 %v3214_v16, %v3213_v11 }
 0x210   : > { %6966 = vmatprep.mubr.msk.bf16.mxu1 %vm326_vm4, %v3245_v17 }
 0x215   : > { %6923 = vmatmul.mubr.msk.bf16.gmra.mrb[24].mxu0 %vm280_vm1, %v8104_v22  ;;  %v8551_v22 = vld [vmem:[%s9151_s4] sm:$0xff]  }
 0x216   : > { %6926 = vmatprep.mubr.msk.bf16.mxu0 %vm280_vm1, %v8323_v43  ;;  %6998 = vmatprep.subr.bf16.mxu1 %v8551_v22 }
 0x21d   : > { %6927 = vmatmul.mubr.msk.bf16.gmra.mrb[28].mxu0 %vm280_vm1, %v2479_v61 }
 0x21e   : > { %6932 = vmatprep.mubr.msk.bf16.mxu0 %vm280_vm1, %v8185_v40  ;;  %v8562_v40 = vld [vmem:[%s9150_s3] ss:$0 sm:$0xff] }
 0x225   : > { %6933 = vmatmul.mubr.msk.bf16.vlgmr.msra.gmra.mrb[0].mxu0 %vm280_vm1, %v8197_v51 }
 0x226   : > { %6936 = vmatprep.mubr.msk.bf16.mxu0 %vm280_vm1, %v8199_v31 }
 0x22d   : > { %6937 = vmatmul.mubr.msk.bf16.gmra.mrb[4].mxu0 %vm280_vm1, %v8205_v0 }
 0x22e   : > { %6940 = vmatprep.mubr.msk.bf16.mxu0 %vm280_vm1, %v8207_v1 }
 0x235   : > { %6941 = vmatmul.mubr.msk.bf16.gmra.mrb[8].mxu0 %vm280_vm1, %v8213_v13 }
 0x236   : > { %6944 = vmatprep.mubr.msk.bf16.mxu0 %vm280_vm1, %v8215_v14 }
 0x23d   : > { %6945 = vmatmul.mubr.msk.bf16.gmra.mrb[12].mxu0 %vm280_vm1, %v8221_v24 }
 0x23e   : > { %6948 = vmatprep.mubr.msk.bf16.mxu0 %vm280_vm1, %v8223_v25 }
 0x245   : > { %6949 = vmatmul.mubr.msk.bf16.gmra.mrb[16].mxu0 %vm280_vm1, %v8229_v35 }
 0x246   : > { %6952 = vmatprep.mubr.msk.bf16.mxu0 %vm280_vm1, %v8231_v41 }
 0x24d   : > { %6953 = vmatmul.mubr.msk.bf16.gmra.mrb[20].mxu0 %vm280_vm1, %v8237_v54 }
 0x24e   : > { %6956 = vmatprep.mubr.msk.bf16.mxu0 %vm280_vm1, %v8239_v57 }
 0x255   : > { %6957 = vmatmul.mubr.msk.bf16.gmra.mrb[24].mxu0 %vm280_vm1, %v8245_v3 }
 0x256   : > { %6960 = vmatprep.mubr.msk.bf16.mxu0 %vm280_vm1, %v8362_v27 }
 0x25d   : > { %6961 = vmatmul.mubr.msk.bf16.gmra.mrb[28].mxu0 %vm280_vm1, %v2773_v5 }
 0x2f8   : > { %v6934_v26 = vpop.f32.mrb[0].mxu0 }
 0x2f9   : > { %v3029_v51 = vmul.f32 %v6934_v26, %v8557_v2  ;;  %v2861_v31 = vpop.f32.mrb[1].mxu0 }
 0x2fa   : > { %v3027_v0 = vmul.f32 %v8557_v2, %v2861_v31  ;;  %v6935_v1 = vpop.f32.mrb[2].mxu0 }
 0x2fb   : > { %v3068_v13 = vadd.f32 %v8562_v40, %v3029_v51  ;;  %v3030_v14 = vmul.f32 %v6935_v1, %v8557_v2  ;;  %v2864_v24 = vpop.f32.mrb[3].mxu0 }
 0x2fc   : > { %v3066_v25 = vadd.f32 %v8562_v40, %v3027_v0  ;;  %v3028_v34 = vmul.f32 %v8557_v2, %v2864_v24 }
 0x2fd   : > { %v3100_v35 = vmax.f32 %v3068_v13, 0.0  ;;  %v3069_v41 = vadd.f32 %v8562_v40, %v3030_v14 }
 0x2fe   : > { %v3098_v45 = vmax.f32 %v3066_v25, 0.0  ;;  %v3067_v48 = vadd.f32 %v8562_v40, %v3028_v34 }
 0x2ff   : > { %3133 = vst.msk [vmem:[#allocation3 + $0x31] sm:$0xff] %vm326_vm4, %v3100_v35  ;;  %v3101_v49 = vmax.f32 %v3069_v41, 0.0 }
 0x300   : > { %3131 = vst.msk [vmem:[#allocation3 + $0x19] sm:$0xff] %vm326_vm4, %v3098_v45  ;;  %v3099_v50 = vmax.f32 %v3067_v48, 0.0  ;;  %v6938_v54 = vpop.f32.mrb[4].mxu0 }
 0x301   : > { %3134 = vst.msk [vmem:[#allocation3 + $0x39] sm:$0xff] %vm326_vm4, %v3101_v49  ;;  %v3033_v57 = vmul.f32 %v6938_v54, %v8557_v2  ;;  %v2877_v58 = vpop.f32.mrb[5].mxu0 }
 0x302   : > { %3132 = vst.msk [vmem:[#allocation3 + $0x21] sm:$0xff] %vm326_vm4, %v3099_v50  ;;  %v3031_v59 = vmul.f32 %v8557_v2, %v2877_v58  ;;  %v6939_v3 = vpop.f32.mrb[6].mxu0 }
 0x303   : > { %v3072_v6 = vadd.f32 %v8562_v40, %v3033_v57  ;;  %v3034_v9 = vmul.f32 %v6939_v3, %v8557_v2  ;;  %v2880_v28 = vpop.f32.mrb[7].mxu0 }
 0x304   : > { %v3070_v42 = vadd.f32 %v8562_v40, %v3031_v59  ;;  %v3032_v12 = vmul.f32 %v8557_v2, %v2880_v28 }
 0x305   : > { %v3104_v19 = vmax.f32 %v3072_v6, 0.0  ;;  %v3073_v20 = vadd.f32 %v8562_v40, %v3034_v9 }
 0x306   : > { %v3102_v32 = vmax.f32 %v3070_v42, 0.0  ;;  %v3071_v37 = vadd.f32 %v8562_v40, %v3032_v12  ;;  %v3217_v46 = vld [vmem:[#allocation3 + $0x31] sm:$0xff] }
 0x307   : > { %3137 = vst.msk [vmem:[#allocation3 + $0x61] sm:$0xff] %vm326_vm4, %v3104_v19  ;;  %v3105_v43 = vmax.f32 %v3073_v20, 0.0  ;;  %v3215_v30 = vld [vmem:[#allocation3 + $0x19] sm:$0xff] }
 0x308   : > { %3135 = vst.msk [vmem:[#allocation3 + $0x49] sm:$0xff] %vm326_vm4, %v3102_v32  ;;  %v3103_v44 = vmax.f32 %v3071_v37, 0.0  ;;  %v6942_v21 = vpop.f32.mrb[8].mxu0  ;;  %v3218_v36 = vld [vmem:[#allocation3 + $0x39] sm:$0xff] }
 0x309   : > { %3138 = vst.msk [vmem:[#allocation3 + $0x69] sm:$0xff] %vm326_vm4, %v3105_v43  ;;  %v3037_v23 = vmul.f32 %v6942_v21, %v8557_v2  ;;  %v2893_v27 = vpop.f32.mrb[9].mxu0  ;;  %v3216_v33 = vld [vmem:[#allocation3 + $0x21] sm:$0xff]  ;;  %v8599_v63 = vpack.c.bf16 %v3218_v36, %v3217_v46 }
 0x30a   : > { %3136 = vst.msk [vmem:[#allocation3 + $0x51] sm:$0xff] %vm326_vm4, %v3103_v44  ;;  %v3035_v29 = vmul.f32 %v8557_v2, %v2893_v27  ;;  %v6943_v38 = vpop.f32.mrb[10].mxu0  ;;  %v8590_v39 = vpack.c.bf16 %v3216_v33, %v3215_v30 }
 0x30b   : > { %v3076_v52 = vadd.f32 %v8562_v40, %v3037_v23  ;;  %v3038_v53 = vmul.f32 %v6943_v38, %v8557_v2  ;;  %v2896_v60 = vpop.f32.mrb[11].mxu0 }
 0x30c   : > { %v3074_v7 = vadd.f32 %v8562_v40, %v3035_v29  ;;  %v3036_v8 = vmul.f32 %v8557_v2, %v2896_v60  ;;  %6967 = vmatmul.mubr.msk.bf16.vlgmr.msra.gmra.mrb[0].mxu1 %vm326_vm4, %v8590_v39 }
 0x30d   : > { %v3108_v15 = vmax.f32 %v3076_v52, 0.0  ;;  %v3077_v18 = vadd.f32 %v8562_v40, %v3038_v53  ;;  %6999 = vmatpush3.bf16.msra.mxu1 %v8551_v22  ;;  %6970 = vmatprep.mubr.msk.bf16.mxu1 %vm326_vm4, %v8599_v63 }
 0x30e   : > { %v3106_v55 = vmax.f32 %v3074_v7, 0.0  ;;  %v3075_v56 = vadd.f32 %v8562_v40, %v3036_v8  ;;  %7032 = vmatprep.subr.bf16.mxu1 %v8595_v47  ;;  %v3221_v31 = vld [vmem:[#allocation3 + $0x61] sm:$0xff] }
 0x30f   : > { %3141 = vst.msk [vmem:[#allocation3 + $0x91] sm:$0xff] %vm326_vm4, %v3108_v15  ;;  %v3109_v61 = vmax.f32 %v3077_v18, 0.0  ;;  %v3219_v16 = vld [vmem:[#allocation3 + $0x49] sm:$0xff] }
 0x310   : > { %3139 = vst.msk [vmem:[#allocation3 + $0x79] sm:$0xff] %vm326_vm4, %v3106_v55  ;;  %v3107_v62 = vmax.f32 %v3075_v56, 0.0  ;;  %v6946_v4 = vpop.f32.mrb[12].mxu0  ;;  %v3222_v5 = vld [vmem:[#allocation3 + $0x69] sm:$0xff] }
 0x311   : > { %3142 = vst.msk [vmem:[#allocation3 + $0x99] sm:$0xff] %vm326_vm4, %v3109_v61  ;;  %v3041_v10 = vmul.f32 %v6946_v4, %v8557_v2  ;;  %v2909_v11 = vpop.f32.mrb[13].mxu0  ;;  %v3220_v17 = vld [vmem:[#allocation3 + $0x51] sm:$0xff]  ;;  %v8621_v14 = vpack.c.bf16 %v3222_v5, %v3221_v31 }
 0x312   : > { %3140 = vst.msk [vmem:[#allocation3 + $0x81] sm:$0xff] %vm326_vm4, %v3107_v62  ;;  %v3039_v22 = vmul.f32 %v8557_v2, %v2909_v11  ;;  %v6947_v26 = vpop.f32.mrb[14].mxu0  ;;  %v8617_v51 = vpack.c.bf16 %v3220_v17, %v3219_v16 }
 0x313   : > { %v3080_v0 = vadd.f32 %v8562_v40, %v3041_v10  ;;  %v3042_v1 = vmul.f32 %v6947_v26, %v8557_v2  ;;  %v2912_v13 = vpop.f32.mrb[15].mxu0 }
 0x314   : > { %v3078_v24 = vadd.f32 %v8562_v40, %v3039_v22  ;;  %v3040_v25 = vmul.f32 %v8557_v2, %v2912_v13  ;;  %6971 = vmatmul.mubr.msk.bf16.gmra.mrb[4].mxu1 %vm326_vm4, %v8617_v51 }
 0x315   : > { %v3112_v34 = vmax.f32 %v3080_v0, 0.0  ;;  %v3081_v35 = vadd.f32 %v8562_v40, %v3042_v1  ;;  %6974 = vmatprep.mubr.msk.bf16.mxu1 %vm326_vm4, %v8621_v14 }
 0x316   : > { %v3110_v41 = vmax.f32 %v3078_v24, 0.0  ;;  %v3079_v45 = vadd.f32 %v8562_v40, %v3040_v25  ;;  %v3225_v42 = vld [vmem:[#allocation3 + $0x91] sm:$0xff] }
 0x317   : > { %3145 = vst.msk [vmem:[#allocation3 + $0xc1] sm:$0xff] %vm326_vm4, %v3112_v34  ;;  %v3113_v48 = vmax.f32 %v3081_v35, 0.0  ;;  %v3223_v59 = vld [vmem:[#allocation3 + $0x79] sm:$0xff] }
 0x318   : > { %3143 = vst.msk [vmem:[#allocation3 + $0xa9] sm:$0xff] %vm326_vm4, %v3110_v41  ;;  %v3111_v49 = vmax.f32 %v3079_v45, 0.0  ;;  %v6950_v50 = vpop.f32.mrb[16].mxu0  ;;  %v3226_v54 = vld [vmem:[#allocation3 + $0x99] sm:$0xff] }
 0x319   : > { %3146 = vst.msk [vmem:[#allocation3 + $0xc9] sm:$0xff] %vm326_vm4, %v3113_v48  ;;  %v3045_v57 = vmul.f32 %v6950_v50, %v8557_v2  ;;  %v2925_v58 = vpop.f32.mrb[17].mxu0  ;;  %v3224_v3 = vld [vmem:[#allocation3 + $0x81] sm:$0xff]  ;;  %v8641_v32 = vpack.c.bf16 %v3226_v54, %v3225_v42 }
 0x31a   : > { %3144 = vst.msk [vmem:[#allocation3 + $0xb1] sm:$0xff] %vm326_vm4, %v3111_v49  ;;  %v3043_v6 = vmul.f32 %v8557_v2, %v2925_v58  ;;  %v6951_v9 = vpop.f32.mrb[18].mxu0  ;;  %v8637_v28 = vpack.c.bf16 %v3224_v3, %v3223_v59 }
 0x31b   : > { %v3084_v12 = vadd.f32 %v8562_v40, %v3045_v57  ;;  %v3046_v19 = vmul.f32 %v6951_v9, %v8557_v2  ;;  %v2928_v20 = vpop.f32.mrb[19].mxu0 }
 0x31c   : > { %v3082_v37 = vadd.f32 %v8562_v40, %v3043_v6  ;;  %v3044_v43 = vmul.f32 %v8557_v2, %v2928_v20  ;;  %6975 = vmatmul.mubr.msk.bf16.gmra.mrb[8].mxu1 %vm326_vm4, %v8637_v28 }
 0x31d   : > { %v3116_v44 = vmax.f32 %v3084_v12, 0.0  ;;  %v3085_v21 = vadd.f32 %v8562_v40, %v3046_v19  ;;  %6978 = vmatprep.mubr.msk.bf16.mxu1 %vm326_vm4, %v8641_v32 }
 0x31e   : > { %v3114_v36 = vmax.f32 %v3082_v37, 0.0  ;;  %v3083_v23 = vadd.f32 %v8562_v40, %v3044_v43  ;;  %v3229_v15 = vld [vmem:[#allocation3 + $0xc1] sm:$0xff] }
 0x31f   : > { %3149 = vst.msk [vmem:[#allocation3 + $0xf1] sm:$0xff] %vm326_vm4, %v3116_v44  ;;  %v3117_v27 = vmax.f32 %v3085_v21, 0.0  ;;  %v3227_v52 = vld [vmem:[#allocation3 + $0xa9] sm:$0xff] }
 0x320   : > { %3147 = vst.msk [vmem:[#allocation3 + $0xd9] sm:$0xff] %vm326_vm4, %v3114_v36  ;;  %v3115_v30 = vmax.f32 %v3083_v23, 0.0  ;;  %v6954_v33 = vpop.f32.mrb[20].mxu0  ;;  %v3230_v29 = vld [vmem:[#allocation3 + $0xc9] sm:$0xff] }
 0x321   : > { %3150 = vst.msk [vmem:[#allocation3 + $0xf9] sm:$0xff] %vm326_vm4, %v3117_v27  ;;  %v3049_v38 = vmul.f32 %v6954_v33, %v8557_v2  ;;  %v2941_v46 = vpop.f32.mrb[21].mxu0  ;;  %v3228_v53 = vld [vmem:[#allocation3 + $0xb1] sm:$0xff]  ;;  %v8661_v61 = vpack.c.bf16 %v3230_v29, %v3229_v15 }
 0x322   : > { %3148 = vst.msk [vmem:[#allocation3 + $0xe1] sm:$0xff] %vm326_vm4, %v3115_v30  ;;  %v3047_v60 = vmul.f32 %v8557_v2, %v2941_v46  ;;  %v6955_v7 = vpop.f32.mrb[22].mxu0  ;;  %v8657_v8 = vpack.c.bf16 %v3228_v53, %v3227_v52 }
 0x323   : > { %v3088_v18 = vadd.f32 %v8562_v40, %v3049_v38  ;;  %v3050_v55 = vmul.f32 %v6955_v7, %v8557_v2  ;;  %v2944_v56 = vpop.f32.mrb[23].mxu0 }
 0x324   : > { %v3086_v62 = vadd.f32 %v8562_v40, %v3047_v60  ;;  %v3048_v4 = vmul.f32 %v8557_v2, %v2944_v56  ;;  %6979 = vmatmul.mubr.msk.bf16.gmra.mrb[12].mxu1 %vm326_vm4, %v8657_v8 }
 0x325   : > { %v3120_v5 = vmax.f32 %v3088_v18, 0.0  ;;  %v3089_v10 = vadd.f32 %v8562_v40, %v3050_v55  ;;  %6982 = vmatprep.mubr.msk.bf16.mxu1 %vm326_vm4, %v8661_v61 }
 0x326   : > { %v3118_v11 = vmax.f32 %v3086_v62, 0.0  ;;  %v3087_v16 = vadd.f32 %v8562_v40, %v3048_v4  ;;  %v3233_v41 = vld [vmem:[#allocation3 + $0xf1] sm:$0xff] }
 0x327   : > { %3153 = vst.msk [vmem:[#allocation3 + $0x121] sm:$0xff] %vm326_vm4, %v3120_v5  ;;  %v3121_v17 = vmax.f32 %v3089_v10, 0.0  ;;  %v3231_v13 = vld [vmem:[#allocation3 + $0xd9] sm:$0xff] }
 0x328   : > { %3151 = vst.msk [vmem:[#allocation3 + $0x109] sm:$0xff] %vm326_vm4, %v3118_v11  ;;  %v3119_v22 = vmax.f32 %v3087_v16, 0.0  ;;  %v6958_v26 = vpop.f32.mrb[24].mxu0  ;;  %v3234_v31 = vld [vmem:[#allocation3 + $0xf9] sm:$0xff]  ;;  %v3164_v11 = vld [vmem:[#allocation3 + $0x8] sm:$0xff] }
 0x329   : > { %3154 = vst.msk [vmem:[#allocation3 + $0x129] sm:$0xff] %vm326_vm4, %v3121_v17  ;;  %v3053_v0 = vmul.f32 %v6958_v26, %v8557_v2  ;;  %v2957_v1 = vpop.f32.mrb[25].mxu0  ;;  %v3232_v24 = vld [vmem:[#allocation3 + $0xe1] sm:$0xff]  ;;  %v8681_v50 = vpack.c.bf16 %v3234_v31, %v3233_v41  ;;  %v3170_v41 = vld [vmem:[#allocation3 + $0x50] sm:$0xff] }
 0x32a   : > { %3152 = vst.msk [vmem:[#allocation3 + $0x111] sm:$0xff] %vm326_vm4, %v3119_v22  ;;  %v3051_v25 = vmul.f32 %v8557_v2, %v2957_v1  ;;  %v6959_v34 = vpop.f32.mrb[26].mxu0  ;;  %v8677_v35 = vpack.c.bf16 %v3232_v24, %v3231_v13  ;;  %v3166_v31 = vld [vmem:[#allocation3 + $0x20] sm:$0xff]  ;;  %v3165_v1 = vld [vmem:[#allocation3 + $0x18] sm:$0xff]  ;;  %v3167_v24 = vld [vmem:[#allocation3 + $0x30] sm:$0xff] }
 0x32b   : > { %v3092_v45 = vadd.f32 %v8562_v40, %v3053_v0  ;;  %v3054_v48 = vmul.f32 %v6959_v34, %v8557_v2  ;;  %v2960_v49 = vpop.f32.mrb[27].mxu0  ;;  %v3168_v0 = vld [vmem:[#allocation3 + $0x38] sm:$0xff]  ;;  %v8728_v13 = vpack.c.bf16 %v3166_v31, %v3165_v1 }
 0x32c   : > { %v3090_v54 = vadd.f32 %v8562_v40, %v3051_v25  ;;  %v3052_v57 = vmul.f32 %v8557_v2, %v2960_v49  ;;  %6983 = vmatmul.mubr.msk.bf16.gmra.mrb[16].mxu1 %vm326_vm4, %v8677_v35  ;;  %v8733_v25 = vld [vmem:[%s9151_s4 + $0x18] sm:$0xff]   ;;  %v8735_v34 = vpack.c.bf16 %v3168_v0, %v3167_v24  ;;  %v3696_v31 = vld [vmem:[#allocation3 + $0x1a] sm:$0xff]  ;;  %v3698_v1 = vld [vmem:[#allocation3 + $0x32] sm:$0xff] }
 0x32d   : > { %v3124_v58 = vmax.f32 %v3092_v45, 0.0  ;;  %v3093_v59 = vadd.f32 %v8562_v40, %v3054_v48  ;;  %6986 = vmatprep.mubr.msk.bf16.mxu1 %vm326_vm4, %v8681_v50  ;;  %v3172_v45 = vld [vmem:[#allocation3 + $0x68] sm:$0xff]  ;;  %v3699_v24 = vld [vmem:[#allocation3 + $0x3a] sm:$0xff] }
 0x32e   : > { %v3122_v3 = vmax.f32 %v3090_v54, 0.0  ;;  %v3091_v6 = vadd.f32 %v8562_v40, %v3052_v57  ;;  %v3237_v27 = vld [vmem:[#allocation3 + $0x121] sm:$0xff] }
 0x32f   : > { %3157 = vst.msk [vmem:[#allocation3 + $0x151] sm:$0xff] %vm326_vm4, %v3124_v58  ;;  %v3125_v9 = vmax.f32 %v3093_v59, 0.0  ;;  %v3235_v43 = vld [vmem:[#allocation3 + $0x109] sm:$0xff]  ;;  %v3171_v54 = vld [vmem:[#allocation3 + $0x60] sm:$0xff]  ;;  %v3176_v58 = vld [vmem:[#allocation3 + $0x98] sm:$0xff] }
 0x330   : > { %3155 = vst.msk [vmem:[#allocation3 + $0x139] sm:$0xff] %vm326_vm4, %v3122_v3  ;;  %v3123_v42 = vmax.f32 %v3091_v6, 0.0  ;;  %v6962_v12 = vpop.f32.mrb[28].mxu0  ;;  %v3238_v19 = vld [vmem:[#allocation3 + $0x129] sm:$0xff]  ;;  %v8745_v57 = vpack.c.bf16 %v3172_v45, %v3171_v54  ;;  %v3173_v59 = vld [vmem:[#allocation3 + $0x78] sm:$0xff] }
 0x331   : > { %3158 = vst.msk [vmem:[#allocation3 + $0x159] sm:$0xff] %vm326_vm4, %v3125_v9  ;;  %v3057_v20 = vmul.f32 %v6962_v12, %v8557_v2  ;;  %v2973_v37 = vpop.f32.mrb[29].mxu0  ;;  %v3236_v44 = vld [vmem:[#allocation3 + $0x111] sm:$0xff]  ;;  %v8701_v38 = vpack.c.bf16 %v3238_v19, %v3237_v27  ;;  %v3169_v48 = vld [vmem:[#allocation3 + $0x48] sm:$0xff] }
 0x332   : > { %3156 = vst.msk [vmem:[#allocation3 + $0x141] sm:$0xff] %vm326_vm4, %v3123_v42  ;;  %v3055_v21 = vmul.f32 %v8557_v2, %v2973_v37  ;;  %v6963_v36 = vpop.f32.mrb[30].mxu0  ;;  %v8697_v23 = vpack.c.bf16 %v3236_v44, %v3235_v43  ;;  %v8743_v49 = vpack.c.bf16 %v3170_v41, %v3169_v48  ;;  %v3175_v6 = vld [vmem:[#allocation3 + $0x90] sm:$0xff]  ;;  %v3180_v12 = vld [vmem:[#allocation3 + $0xc8] sm:$0xff]  ;;  %v3179_v37 = vld [vmem:[#allocation3 + $0xc0] sm:$0xff]  ;;  %v8801_v48 = vpack.c.bf16 %v3699_v24, %v3698_v1 }
 0x333   : > { %v3096_v30 = vadd.f32 %v8562_v40, %v3057_v20  ;;  %v3058_v33 = vmul.f32 %v6963_v36, %v8557_v2  ;;  %v2976_v29 = vpop.f32.mrb[31].mxu0  ;;  %v8753_v9 = vpack.c.bf16 %v3176_v58, %v3175_v6  ;;  %v3178_v42 = vld [vmem:[#allocation3 + $0xb0] sm:$0xff]  ;;  %v3177_v19 = vld [vmem:[#allocation3 + $0xa8] sm:$0xff]  ;;  %v8761_v43 = vpack.c.bf16 %v3180_v12, %v3179_v37  ;;  %v3182_v44 = vld [vmem:[#allocation3 + $0xe0] sm:$0xff] }
 0x334   : > { %v3094_v46 = vadd.f32 %v8562_v40, %v3055_v21  ;;  %v3056_v52 = vmul.f32 %v8557_v2, %v2976_v29  ;;  %6987 = vmatmul.mubr.msk.bf16.gmra.mrb[20].mxu1 %vm326_vm4, %v8697_v23  ;;  %v8759_v20 = vpack.c.bf16 %v3178_v42, %v3177_v19  ;;  %v3184_v21 = vld [vmem:[#allocation3 + $0xf8] sm:$0xff]  ;;  %v3186_v29 = vld [vmem:[#allocation3 + $0x110] sm:$0xff]  ;;  %v3697_v0 = vld [vmem:[#allocation3 + $0x22] sm:$0xff] }
 0x335   : > { %v3128_v53 = vmax.f32 %v3096_v30, 0.0  ;;  %v3097_v60 = vadd.f32 %v8562_v40, %v3058_v33  ;;  %6990 = vmatprep.mubr.msk.bf16.mxu1 %vm326_vm4, %v8701_v38  ;;  %v3181_v36 = vld [vmem:[#allocation3 + $0xd8] sm:$0xff]  ;;  %v3183_v30 = vld [vmem:[#allocation3 + $0xf0] sm:$0xff]  ;;  %v8796_v41 = vpack.c.bf16 %v3697_v0, %v3696_v31  ;;  %v3702_v58 = vld [vmem:[#allocation3 + $0x62] sm:$0xff] }
 0x336   : > { %v3126_v7 = vmax.f32 %v3094_v46, 0.0  ;;  %v3095_v15 = vadd.f32 %v8562_v40, %v3056_v52  ;;  %v3241_v5 = vld [vmem:[#allocation3 + $0x151] sm:$0xff]  ;;  %v3163_v40 = vld [vmem:[#allocation3] sm:$0xff]  ;;  %v8767_v27 = vpack.c.bf16 %v3182_v44, %v3181_v36  ;;  %v8769_v33 = vpack.c.bf16 %v3184_v21, %v3183_v30  ;;  %v3188_v46 = vld [vmem:[#allocation3 + $0x128] sm:$0xff] }
 0x337   : > { %3161 = vst.msk [vmem:[#allocation3 + $0x181] sm:$0xff] %vm326_vm4, %v3128_v53  ;;  %v3129_v18 = vmax.f32 %v3097_v60, 0.0  ;;  %v3239_v2 = vld [vmem:[#allocation3 + $0x139] sm:$0xff]  ;;  %v3195_v22 = vpack.c.bf16 %v3164_v11, %v3163_v40  ;;  %v3185_v52 = vld [vmem:[#allocation3 + $0x108] sm:$0xff]  ;;  %v7804_v45 = vld [vmem:[%s9151_s4 + $0x20] sm:$0xff]  }
 0x338   : > { %3159 = vst.msk [vmem:[#allocation3 + $0x169] sm:$0xff] %vm326_vm4, %v3126_v7  ;;  %v3127_v55 = vmax.f32 %v3095_v15, 0.0  ;;  %v3242_v56 = vld [vmem:[#allocation3 + $0x159] sm:$0xff]  ;;  %v8775_v53 = vpack.c.bf16 %v3186_v29, %v3185_v52  ;;  %v3695_v40 = vld [vmem:[#allocation3 + $0xa] sm:$0xff]  ;;  %v3710_v29 = vld [vmem:[#allocation3 + $0xc2] sm:$0xff] }
 0x339   : > { %3162 = vst.msk [vmem:[#allocation3 + $0x189] sm:$0xff] %vm326_vm4, %v3129_v18  ;;  %v3240_v62 = vld [vmem:[#allocation3 + $0x141] sm:$0xff]  ;;  %v8717_v10 = vpack.c.bf16 %v3242_v56, %v3241_v5  ;;  %v3192_v18 = vld [vmem:[#allocation3 + $0x158] sm:$0xff]  ;;  %v3700_v54 = vld [vmem:[#allocation3 + $0x4a] sm:$0xff] }
 0x33a   : > { %3160 = vst.msk [vmem:[#allocation3 + $0x171] sm:$0xff] %vm326_vm4, %v3127_v55  ;;  %v8715_v4 = vpack.c.bf16 %v3240_v62, %v3239_v2  ;;  %v3187_v60 = vld [vmem:[#allocation3 + $0x120] sm:$0xff]  ;;  %v3189_v55 = vld [vmem:[#allocation3 + $0x138] sm:$0xff]  ;;  %v3191_v2 = vld [vmem:[#allocation3 + $0x150] sm:$0xff] }
 0x33b   : > { %v8777_v7 = vpack.c.bf16 %v3188_v46, %v3187_v60  ;;  %v3190_v15 = vld [vmem:[#allocation3 + $0x140] sm:$0xff]  ;;  %v8785_v62 = vpack.c.bf16 %v3192_v18, %v3191_v2  ;;  %v3706_v19 = vld [vmem:[#allocation3 + $0x92] sm:$0xff]  ;;  %v3708_v36 = vld [vmem:[#allocation3 + $0xaa] sm:$0xff] }
 0x33c   : > { %6991 = vmatmul.mubr.msk.bf16.gmra.mrb[24].mxu1 %vm326_vm4, %v8715_v4  ;;  %v8783_v56 = vpack.c.bf16 %v3190_v15, %v3189_v55  ;;  %v3694_v5 = vld [vmem:[#allocation3 + $0x2] sm:$0xff]  ;;  %v3704_v12 = vld [vmem:[#allocation3 + $0x7a] sm:$0xff]  ;;  %v3709_v30 = vld [vmem:[#allocation3 + $0xb2] sm:$0xff] }
 0x33d   : > { %6994 = vmatprep.mubr.msk.bf16.mxu1 %vm326_vm4, %v8717_v10  ;;  %v3707_v37 = vld [vmem:[#allocation3 + $0x9a] sm:$0xff]  ;;  %v3711_v46 = vld [vmem:[#allocation3 + $0xca] sm:$0xff]  ;;  %v8824_v52 = vpack.c.bf16 %v3709_v30, %v3708_v36  ;;  %v3713_v18 = vld [vmem:[#allocation3 + $0xe2] sm:$0xff] }
 0x33e   : > { %v8818_v21 = vpack.c.bf16 %v3707_v37, %v3706_v19  ;;  %v8826_v60 = vpack.c.bf16 %v3711_v46, %v3710_v29  ;;  %v3712_v15 = vld [vmem:[#allocation3 + $0xda] sm:$0xff]  ;;  %v3714_v55 = vld [vmem:[#allocation3 + $0xf2] sm:$0xff]  ;;  %v3719_v31 = vld [vmem:[#allocation3 + $0x12a] sm:$0xff] }
 0x33f   : > { %v3243_v16 = vld [vmem:[#allocation3 + $0x169] sm:$0xff]  ;;  %v3715_v2 = vld [vmem:[#allocation3 + $0xfa] sm:$0xff] }
 0x340   : > { %v3720_v24 = vld [vmem:[#allocation3 + $0x13a] sm:$0xff] }
 0x341   : > { %v3244_v17 = vld [vmem:[#allocation3 + $0x171] sm:$0xff]  ;;  %v7806_v29 = vld [vmem:[%s9151_s4 + $0x30] sm:$0xff]  }
 0x342   : > { %v8723_v26 = vpack.c.bf16 %v3244_v17, %v3243_v16  ;;  %v3194_v11 = vld [vmem:[#allocation3 + $0x170] sm:$0xff]  ;;  %v3193_v16 = vld [vmem:[#allocation3 + $0x168] sm:$0xff]  ;;  %v3726_v17 = vpack.c.bf16 %v3695_v40, %v3694_v5  ;;  %v8832_v5 = vpack.c.bf16 %v3713_v18, %v3712_v15  ;;  %v8834_v40 = vpack.c.bf16 %v3715_v2, %v3714_v55  ;;  %v7805_v36 = vld [vmem:[%s9151_s4 + $0x28] sm:$0xff]  }
 0x343   : > { %v3725_v19 = vld [vmem:[#allocation3 + $0x172] sm:$0xff]  ;;  %v5198_v2 = vld [vmem:[#allocation3 + $0xc9] sm:$0xff] }
 0x344   : > { %6995 = vmatmul.mubr.msk.bf16.gmra.mrb[28].mxu1 %vm326_vm4, %v8723_v26  ;;  %v5193_v15 = vld [vmem:[#allocation3 + $0x91] sm:$0xff] }
 0x345   : > { %7000 = vmatprep.mubr.msk.bf16.mxu1 %vm326_vm4, %v3195_v22  ;;  %v8791_v22 = vpack.c.bf16 %v3194_v11, %v3193_v16  ;;  %v3716_v11 = vld [vmem:[#allocation3 + $0x10a] sm:$0xff]  ;;  %v3717_v16 = vld [vmem:[#allocation3 + $0x112] sm:$0xff] }
 0x346   : > { %v8840_v0 = vpack.c.bf16 %v3717_v16, %v3716_v11  ;;  %v5196_v55 = vld [vmem:[#allocation3 + $0xb1] sm:$0xff]  ;;  %v5195_v11 = vld [vmem:[#allocation3 + $0xa9] sm:$0xff] }
 0x347   : > { %v5222_v16 = vpack.c.bf16 %v5196_v55, %v5195_v11 }
 0x34c   : > { %7001 = vmatmul.mubr.msk.bf16.vlgmr.msra.gmra.mrb[0].mxu1 %vm326_vm4, %v8728_v13 }
 0x34d   : > { %7033 = vmatpush3.bf16.msra.mxu1 %v8595_v47  ;;  %7004 = vmatprep.mubr.msk.bf16.mxu1 %vm326_vm4, %v8735_v34  ;;  %v3174_v47 = vld [vmem:[#allocation3 + $0x80] sm:$0xff] }
 0x34e   : > { %7066 = vmatprep.subr.bf16.mxu1 %v8733_v25  ;;  %v8751_v3 = vpack.c.bf16 %v3174_v47, %v3173_v59  ;;  %v3701_v47 = vld [vmem:[#allocation3 + $0x52] sm:$0xff]  ;;  %v3703_v59 = vld [vmem:[#allocation3 + $0x6a] sm:$0xff] }
 0x34f   : > { %v8808_v6 = vpack.c.bf16 %v3701_v47, %v3700_v54  ;;  %v8810_v42 = vpack.c.bf16 %v3703_v59, %v3702_v58  ;;  %v3721_v54 = vld [vmem:[#allocation3 + $0x142] sm:$0xff]  ;;  %v3722_v47 = vld [vmem:[#allocation3 + $0x152] sm:$0xff]  ;;  %v3723_v58 = vld [vmem:[#allocation3 + $0x15a] sm:$0xff] }
 0x350   : > { %v8848_v59 = vpack.c.bf16 %v3721_v54, %v3720_v24 }
 0x354   : > { %7005 = vmatmul.mubr.msk.bf16.gmra.mrb[4].mxu1 %vm326_vm4, %v8743_v49 }
 0x355   : > { %7008 = vmatprep.mubr.msk.bf16.mxu1 %vm326_vm4, %v8745_v57 }
 0x35c   : > { %7009 = vmatmul.mubr.msk.bf16.gmra.mrb[8].mxu1 %vm326_vm4, %v8751_v3 }
 0x35d   : > { %7012 = vmatprep.mubr.msk.bf16.mxu1 %vm326_vm4, %v8753_v9 }
 0x364   : > { %7013 = vmatmul.mubr.msk.bf16.gmra.mrb[12].mxu1 %vm326_vm4, %v8759_v20 }
 0x365   : > { %7016 = vmatprep.mubr.msk.bf16.mxu1 %vm326_vm4, %v8761_v43 }
 0x36c   : > { %7017 = vmatmul.mubr.msk.bf16.gmra.mrb[16].mxu1 %vm326_vm4, %v8767_v27 }
 0x36d   : > { %7020 = vmatprep.mubr.msk.bf16.mxu1 %vm326_vm4, %v8769_v33 }
 0x374   : > { %7021 = vmatmul.mubr.msk.bf16.gmra.mrb[20].mxu1 %vm326_vm4, %v8775_v53 }
 0x375   : > { %7024 = vmatprep.mubr.msk.bf16.mxu1 %vm326_vm4, %v8777_v7 }
 0x37c   : > { %7025 = vmatmul.mubr.msk.bf16.gmra.mrb[24].mxu1 %vm326_vm4, %v8783_v56 }
 0x37d   : > { %7028 = vmatprep.mubr.msk.bf16.mxu1 %vm326_vm4, %v8785_v62 }
 0x384   : > { %7029 = vmatmul.mubr.msk.bf16.gmra.mrb[28].mxu1 %vm326_vm4, %v8791_v22 }
 0x385   : > { %7034 = vmatprep.mubr.msk.bf16.mxu1 %vm326_vm4, %v3726_v17  ;;  %v3718_v17 = vld [vmem:[#allocation3 + $0x122] sm:$0xff] }
 0x386   : > { %v8842_v1 = vpack.c.bf16 %v3719_v31, %v3718_v17  ;;  %v5197_v17 = vld [vmem:[#allocation3 + $0xc1] sm:$0xff] }
 0x387   : > { %v5223_v31 = vpack.c.bf16 %v5198_v2, %v5197_v17 }
 0x38c   : > { %7035 = vmatmul.mubr.msk.bf16.vlgmr.msra.gmra.mrb[0].mxu1 %vm326_vm4, %v8796_v41 }
 0x38d   : > { %7067 = vmatpush3.bf16.msra.mxu1 %v8733_v25  ;;  %7038 = vmatprep.mubr.msk.bf16.mxu1 %vm326_vm4, %v8801_v48  ;;  %v3705_v25 = vld [vmem:[#allocation3 + $0x82] sm:$0xff] }
 0x38e   : > { %7100 = vmatprep.subr.bf16.mxu1 %v7804_v45  ;;  %v8816_v44 = vpack.c.bf16 %v3705_v25, %v3704_v12  ;;  %v8850_v12 = vpack.c.bf16 %v3723_v58, %v3722_v47  ;;  %v3724_v25 = vld [vmem:[#allocation3 + $0x16a] sm:$0xff] }
 0x38f   : > { %v8856_v37 = vpack.c.bf16 %v3725_v19, %v3724_v25 }
 0x394   : > { %7039 = vmatmul.mubr.msk.bf16.gmra.mrb[4].mxu1 %vm326_vm4, %v8808_v6 }
 0x395   : > { %7042 = vmatprep.mubr.msk.bf16.mxu1 %vm326_vm4, %v8810_v42 }
 0x39c   : > { %7043 = vmatmul.mubr.msk.bf16.gmra.mrb[8].mxu1 %vm326_vm4, %v8816_v44 }
 0x39d   : > { %7046 = vmatprep.mubr.msk.bf16.mxu1 %vm326_vm4, %v8818_v21 }
 0x3a4   : > { %7047 = vmatmul.mubr.msk.bf16.gmra.mrb[12].mxu1 %vm326_vm4, %v8824_v52 }
 0x3a5   : > { %7050 = vmatprep.mubr.msk.bf16.mxu1 %vm326_vm4, %v8826_v60 }
 0x3ac   : > { %7051 = vmatmul.mubr.msk.bf16.gmra.mrb[16].mxu1 %vm326_vm4, %v8832_v5 }
 0x3ad   : > { %7054 = vmatprep.mubr.msk.bf16.mxu1 %vm326_vm4, %v8834_v40 }
 0x3b4   : > { %7055 = vmatmul.mubr.msk.bf16.gmra.mrb[20].mxu1 %vm326_vm4, %v8840_v0 }
 0x3b5   : > { %7058 = vmatprep.mubr.msk.bf16.mxu1 %vm326_vm4, %v8842_v1 }
 0x3bc   : > { %7059 = vmatmul.mubr.msk.bf16.gmra.mrb[24].mxu1 %vm326_vm4, %v8848_v59 }
 0x3bd   : > { %7062 = vmatprep.mubr.msk.bf16.mxu1 %vm326_vm4, %v8850_v12 }
 0x3c4   : > { %7063 = vmatmul.mubr.msk.bf16.gmra.mrb[28].mxu1 %vm326_vm4, %v8856_v37 }
 0x3c5   : > { %7068 = vmatprep.mubr.msk.bf16.mxu1 %vm326_vm4, %v8728_v13  ;;  %v4023_v13 = vld [vmem:[#allocation3 + $0x188] sm:$0xff] }
 0x3cc   : > { %7069 = vmatmul.mubr.msk.bf16.vlgmr.msra.gmra.mrb[0].mxu1 %vm326_vm4, %v8735_v34 }
 0x3cd   : > { %7101 = vmatpush3.bf16.msra.mxu1 %v7804_v45  ;;  %7072 = vmatprep.mubr.msk.bf16.mxu1 %vm326_vm4, %v8743_v49  ;;  %v4022_v45 = vld [vmem:[#allocation3 + $0x180] sm:$0xff] }
 0x3ce   : > { %7134 = vmatprep.subr.bf16.mxu1 %v7805_v36  ;;  %v8893_v30 = vpack.c.bf16 %v4023_v13, %v4022_v45 }
 0x3d4   : > { %7073 = vmatmul.mubr.msk.bf16.gmra.mrb[4].mxu1 %vm326_vm4, %v8745_v57 }
 0x3d5   : > { %7076 = vmatprep.mubr.msk.bf16.mxu1 %vm326_vm4, %v8751_v3 }
 0x3dc   : > { %7077 = vmatmul.mubr.msk.bf16.gmra.mrb[8].mxu1 %vm326_vm4, %v8753_v9 }
 0x3dd   : > { %7080 = vmatprep.mubr.msk.bf16.mxu1 %vm326_vm4, %v8759_v20 }
 0x3e4   : > { %7081 = vmatmul.mubr.msk.bf16.gmra.mrb[12].mxu1 %vm326_vm4, %v8761_v43 }
 0x3e5   : > { %7084 = vmatprep.mubr.msk.bf16.mxu1 %vm326_vm4, %v8767_v27 }
 0x3ec   : > { %7085 = vmatmul.mubr.msk.bf16.gmra.mrb[16].mxu1 %vm326_vm4, %v8769_v33 }
 0x3ed   : > { %7088 = vmatprep.mubr.msk.bf16.mxu1 %vm326_vm4, %v8775_v53 }
 0x3f4   : > { %7089 = vmatmul.mubr.msk.bf16.gmra.mrb[20].mxu1 %vm326_vm4, %v8777_v7 }
 0x3f5   : > { %7092 = vmatprep.mubr.msk.bf16.mxu1 %vm326_vm4, %v8783_v56 }
 0x3fc   : > { %7093 = vmatmul.mubr.msk.bf16.gmra.mrb[24].mxu1 %vm326_vm4, %v8785_v62 }
 0x3fd   : > { %7096 = vmatprep.mubr.msk.bf16.mxu1 %vm326_vm4, %v8791_v22 }
 0x404   : > { %7097 = vmatmul.mubr.msk.bf16.gmra.mrb[28].mxu1 %vm326_vm4, %v8893_v30 }
 0x405   : > { %7102 = vmatprep.mubr.msk.bf16.mxu1 %vm326_vm4, %v8590_v39  ;;  %v4321_v39 = vld [vmem:[#allocation3 + $0x189] sm:$0xff] }
 0x40c   : > { %7103 = vmatmul.mubr.msk.bf16.vlgmr.msra.gmra.mrb[0].mxu1 %vm326_vm4, %v8599_v63  ;;  %v4320_v63 = vld [vmem:[#allocation3 + $0x181] sm:$0xff] }
 0x40d   : > { %7135 = vmatpush3.bf16.msra.mxu1 %v7805_v36  ;;  %7106 = vmatprep.mubr.msk.bf16.mxu1 %vm326_vm4, %v8617_v51  ;;  %v8930_v51 = vpack.c.bf16 %v4321_v39, %v4320_v63 }
 0x40e   : > { %7168 = vmatprep.subr.bf16.mxu1 %v7806_v29 }
 0x414   : > { %7107 = vmatmul.mubr.msk.bf16.gmra.mrb[4].mxu1 %vm326_vm4, %v8621_v14  ;;  %v7807_v14 = vld [vmem:[%s9151_s4 + $0x38] sm:$0xff]  }
 0x415   : > { %7110 = vmatprep.mubr.msk.bf16.mxu1 %vm326_vm4, %v8637_v28  ;;  %v4618_v28 = vld [vmem:[#allocation3 + $0x182] sm:$0xff] }
 0x41c   : > { %7111 = vmatmul.mubr.msk.bf16.gmra.mrb[8].mxu1 %vm326_vm4, %v8641_v32  ;;  %v4619_v32 = vld [vmem:[#allocation3 + $0x18a] sm:$0xff] }
 0x41d   : > { %7114 = vmatprep.mubr.msk.bf16.mxu1 %vm326_vm4, %v8657_v8  ;;  %v8967_v8 = vpack.c.bf16 %v4619_v32, %v4618_v28 }
 0x424   : > { %7115 = vmatmul.mubr.msk.bf16.gmra.mrb[12].mxu1 %vm326_vm4, %v8661_v61  ;;  %v7808_v61 = vld [vmem:[%s9151_s4 + $0x40] sm:$0xff]  }
 0x425   : > { %7118 = vmatprep.mubr.msk.bf16.mxu1 %vm326_vm4, %v8677_v35 }
 0x42c   : > { %7119 = vmatmul.mubr.msk.bf16.gmra.mrb[16].mxu1 %vm326_vm4, %v8681_v50 }
 0x42d   : > { %7122 = vmatprep.mubr.msk.bf16.mxu1 %vm326_vm4, %v8697_v23 }
 0x434   : > { %7123 = vmatmul.mubr.msk.bf16.gmra.mrb[20].mxu1 %vm326_vm4, %v8701_v38 }
 0x435   : > { %7126 = vmatprep.mubr.msk.bf16.mxu1 %vm326_vm4, %v8715_v4 }
 0x43c   : > { %7127 = vmatmul.mubr.msk.bf16.gmra.mrb[24].mxu1 %vm326_vm4, %v8717_v10 }
 0x43d   : > { %7130 = vmatprep.mubr.msk.bf16.mxu1 %vm326_vm4, %v8723_v26 }
 0x444   : > { %7131 = vmatmul.mubr.msk.bf16.gmra.mrb[28].mxu1 %vm326_vm4, %v8930_v51 }
 0x445   : > { %7136 = vmatprep.mubr.msk.bf16.mxu1 %vm326_vm4, %v8796_v41  ;;  %v5191_v41 = vld [vmem:[#allocation3 + $0x79] sm:$0xff] }
 0x44c   : > { %7137 = vmatmul.mubr.msk.bf16.vlgmr.msra.gmra.mrb[0].mxu1 %vm326_vm4, %v8801_v48 }
 0x44d   : > { %7169 = vmatpush3.bf16.msra.mxu1 %v7806_v29  ;;  %7140 = vmatprep.mubr.msk.bf16.mxu1 %vm326_vm4, %v8808_v6 }
 0x44e   : > { %7202 = vmatprep.subr.bf16.mxu1 %v7807_v14 }
 0x454   : > { %7141 = vmatmul.mubr.msk.bf16.gmra.mrb[4].mxu1 %vm326_vm4, %v8810_v42 }
 0x455   : > { %7144 = vmatprep.mubr.msk.bf16.mxu1 %vm326_vm4, %v8816_v44 }
 0x45c   : > { %7145 = vmatmul.mubr.msk.bf16.gmra.mrb[8].mxu1 %vm326_vm4, %v8818_v21 }
 0x45d   : > { %7148 = vmatprep.mubr.msk.bf16.mxu1 %vm326_vm4, %v8824_v52 }
 0x464   : > { %7149 = vmatmul.mubr.msk.bf16.gmra.mrb[12].mxu1 %vm326_vm4, %v8826_v60 }
 0x465   : > { %7152 = vmatprep.mubr.msk.bf16.mxu1 %vm326_vm4, %v8832_v5 }
 0x46c   : > { %7153 = vmatmul.mubr.msk.bf16.gmra.mrb[16].mxu1 %vm326_vm4, %v8834_v40 }
 0x46d   : > { %7156 = vmatprep.mubr.msk.bf16.mxu1 %vm326_vm4, %v8840_v0 }
 0x474   : > { %7157 = vmatmul.mubr.msk.bf16.gmra.mrb[20].mxu1 %vm326_vm4, %v8842_v1 }
 0x475   : > { %7160 = vmatprep.mubr.msk.bf16.mxu1 %vm326_vm4, %v8848_v59 }
 0x47c   : > { %7161 = vmatmul.mubr.msk.bf16.gmra.mrb[24].mxu1 %vm326_vm4, %v8850_v12 }
 0x47d   : > { %7164 = vmatprep.mubr.msk.bf16.mxu1 %vm326_vm4, %v8856_v37 }
 0x484   : > { %7165 = vmatmul.mubr.msk.bf16.gmra.mrb[28].mxu1 %vm326_vm4, %v8967_v8 }
 0x485   : > { %7170 = vmatprep.mubr.msk.bf16.mxu1 %vm326_vm4, %v8735_v34  ;;  %v4917_v34 = vld [vmem:[#allocation3 + $0x198] sm:$0xff] }
 0x48c   : > { %7171 = vmatmul.mubr.msk.bf16.vlgmr.msra.gmra.mrb[0].mxu1 %vm326_vm4, %v8743_v49  ;;  %v4918_v49 = vld [vmem:[#allocation3 + $0x1a0] sm:$0xff] }
 0x48d   : > { %7203 = vmatpush3.bf16.msra.mxu1 %v7807_v14  ;;  %7174 = vmatprep.mubr.msk.bf16.mxu1 %vm326_vm4, %v8745_v57  ;;  %v4934_v57 = vpack.c.bf16 %v4918_v49, %v4917_v34 }
 0x48e   : > { %7236 = vmatprep.subr.bf16.mxu1 %v7808_v61 }
 0x494   : > { %7175 = vmatmul.mubr.msk.bf16.gmra.mrb[4].mxu1 %vm326_vm4, %v8751_v3  ;;  %v5186_v3 = vld [vmem:[#allocation3 + $0x39] sm:$0xff] }
 0x495   : > { %7178 = vmatprep.mubr.msk.bf16.mxu1 %vm326_vm4, %v8753_v9  ;;  %v5185_v9 = vld [vmem:[#allocation3 + $0x31] sm:$0xff] }
 0x49c   : > { %7179 = vmatmul.mubr.msk.bf16.gmra.mrb[8].mxu1 %vm326_vm4, %v8759_v20  ;;  %v5217_v20 = vpack.c.bf16 %v5186_v3, %v5185_v9 }
 0x49d   : > { %7182 = vmatprep.mubr.msk.bf16.mxu1 %vm326_vm4, %v8761_v43  ;;  %v5188_v43 = vld [vmem:[#allocation3 + $0x51] sm:$0xff] }
 0x4a4   : > { %7183 = vmatmul.mubr.msk.bf16.gmra.mrb[12].mxu1 %vm326_vm4, %v8767_v27  ;;  %v5190_v27 = vld [vmem:[#allocation3 + $0x69] sm:$0xff] }
 0x4a5   : > { %7186 = vmatprep.mubr.msk.bf16.mxu1 %vm326_vm4, %v8769_v33  ;;  %v5187_v33 = vld [vmem:[#allocation3 + $0x49] sm:$0xff] }
 0x4ac   : > { %7187 = vmatmul.mubr.msk.bf16.gmra.mrb[16].mxu1 %vm326_vm4, %v8775_v53  ;;  %v5218_v53 = vpack.c.bf16 %v5188_v43, %v5187_v33 }
 0x4ad   : > { %7190 = vmatprep.mubr.msk.bf16.mxu1 %vm326_vm4, %v8777_v7  ;;  %v5189_v7 = vld [vmem:[#allocation3 + $0x61] sm:$0xff] }
 0x4b4   : > { %7191 = vmatmul.mubr.msk.bf16.gmra.mrb[20].mxu1 %vm326_vm4, %v8783_v56  ;;  %v5219_v56 = vpack.c.bf16 %v5190_v27, %v5189_v7 }
 0x4b5   : > { %7194 = vmatprep.mubr.msk.bf16.mxu1 %vm326_vm4, %v8785_v62  ;;  %v5192_v62 = vld [vmem:[#allocation3 + $0x81] sm:$0xff] }
 0x4b6   : > { %v5220_v46 = vpack.c.bf16 %v5192_v62, %v5191_v41 }
 0x4bc   : > { %7195 = vmatmul.mubr.msk.bf16.gmra.mrb[24].mxu1 %vm326_vm4, %v8791_v22  ;;  %v5194_v22 = vld [vmem:[#allocation3 + $0x99] sm:$0xff] }
 0x4bd   : > { %7198 = vmatprep.mubr.msk.bf16.mxu1 %vm326_vm4, %v8893_v30  ;;  %v5221_v18 = vpack.c.bf16 %v5194_v22, %v5193_v15 }
 0x4c4   : > { %7199 = vmatmul.mubr.msk.bf16.gmra.mrb[28].mxu1 %vm326_vm4, %v4934_v57 }
 0x4c5   : > { %7204 = vmatprep.mubr.msk.bf16.mxu1 %vm326_vm4, %v5217_v20 }
 0x4cc   : > { %7205 = vmatmul.mubr.msk.bf16.vlgmr.msra.gmra.mrb[0].mxu1 %vm326_vm4, %v5218_v53 }
 0x4cd   : > { %7237 = vmatpush3.bf16.msra.mxu1 %v7808_v61  ;;  %7208 = vmatprep.mubr.msk.bf16.mxu1 %vm326_vm4, %v5219_v56 }
 0x4d4   : > { %7209 = vmatmul.mubr.msk.bf16.gmra.mrb[4].mxu1 %vm326_vm4, %v5220_v46 }
 0x4d5   : > { %7212 = vmatprep.mubr.msk.bf16.mxu1 %vm326_vm4, %v5221_v18 }
 0x4dc   : > { %7213 = vmatmul.mubr.msk.bf16.gmra.mrb[8].mxu1 %vm326_vm4, %v5222_v16 }
 0x4dd   : > { %7216 = vmatprep.mubr.msk.bf16.mxu1 %vm326_vm4, %v5223_v31 }
 0x4e4   : > { %7217 = vmatmul.mubr.msk.bf16.gmra.mrb[12].mxu1 %vm326_vm4, %v8677_v35  ;;  %v5215_v35 = vld [vmem:[#allocation3 + $0x199] sm:$0xff] }
 0x4e5   : > { %7220 = vmatprep.mubr.msk.bf16.mxu1 %vm326_vm4, %v8681_v50  ;;  %v5216_v50 = vld [vmem:[#allocation3 + $0x1a1] sm:$0xff] }
 0x4e6   : > { %v5232_v24 = vpack.c.bf16 %v5216_v50, %v5215_v35 }
 0x4ec   : > { %7221 = vmatmul.mubr.msk.bf16.gmra.mrb[16].mxu1 %vm326_vm4, %v8697_v23  ;;  %v5513_v23 = vld [vmem:[#allocation3 + $0x19a] sm:$0xff] }
 0x4ed   : > { %7224 = vmatprep.mubr.msk.bf16.mxu1 %vm326_vm4, %v8701_v38  ;;  %v5514_v38 = vld [vmem:[#allocation3 + $0x1a2] sm:$0xff] }
 0x4f4   : > { %7225 = vmatmul.mubr.msk.bf16.gmra.mrb[20].mxu1 %vm326_vm4, %v8715_v4  ;;  %v5530_v4 = vpack.c.bf16 %v5514_v38, %v5513_v23 }
 0x4f5   : > { %7228 = vmatprep.mubr.msk.bf16.mxu1 %vm326_vm4, %v8717_v10  ;;  %v9063_v10 = vld [vmem:[%s9152_s5] ss:$0 sm:$0xff] }
 0x4fc   : > { %7229 = vmatmul.mubr.msk.bf16.gmra.mrb[24].mxu1 %vm326_vm4, %v8723_v26 }
 0x4fd   : > { %7232 = vmatprep.mubr.msk.bf16.mxu1 %vm326_vm4, %v8930_v51 }
 0x504   : > { %7233 = vmatmul.mubr.msk.bf16.gmra.mrb[28].mxu1 %vm326_vm4, %v5232_v24 }
 0x505   : > { %7238 = vmatprep.mubr.msk.bf16.mxu1 %vm326_vm4, %v8801_v48 }
 0x50c   : > { %7239 = vmatmul.mubr.msk.bf16.vlgmr.msra.gmra.mrb[0].mxu1 %vm326_vm4, %v8808_v6  ;;  %v9068_v6 = vld [vmem:[%s9153_s6] ss:$0 sm:$0xff] }
 0x50d   : > { %7242 = vmatprep.mubr.msk.bf16.mxu1 %vm326_vm4, %v8810_v42 }
 0x514   : > { %7243 = vmatmul.mubr.msk.bf16.gmra.mrb[4].mxu1 %vm326_vm4, %v8816_v44 }
 0x515   : > { %7246 = vmatprep.mubr.msk.bf16.mxu1 %vm326_vm4, %v8818_v21 }
 0x51c   : > { %7247 = vmatmul.mubr.msk.bf16.gmra.mrb[8].mxu1 %vm326_vm4, %v8824_v52 }
 0x51d   : > { %7250 = vmatprep.mubr.msk.bf16.mxu1 %vm326_vm4, %v8826_v60 }
 0x524   : > { %7251 = vmatmul.mubr.msk.bf16.gmra.mrb[12].mxu1 %vm326_vm4, %v8832_v5 }
 0x525   : > { %7254 = vmatprep.mubr.msk.bf16.mxu1 %vm326_vm4, %v8834_v40 }
 0x52c   : > { %7255 = vmatmul.mubr.msk.bf16.gmra.mrb[16].mxu1 %vm326_vm4, %v8840_v0 }
 0x52d   : > { %7258 = vmatprep.mubr.msk.bf16.mxu1 %vm326_vm4, %v8842_v1 }
 0x534   : > { %7259 = vmatmul.mubr.msk.bf16.gmra.mrb[20].mxu1 %vm326_vm4, %v8848_v59 }
 0x535   : > { %7262 = vmatprep.mubr.msk.bf16.mxu1 %vm326_vm4, %v8850_v12 }
 0x53c   : > { %7263 = vmatmul.mubr.msk.bf16.gmra.mrb[24].mxu1 %vm326_vm4, %v8856_v37 }
 0x53d   : > { %7266 = vmatprep.mubr.msk.bf16.mxu1 %vm326_vm4, %v8967_v8 }
 0x544   : > { %7267 = vmatmul.mubr.msk.bf16.gmra.mrb[28].mxu1 %vm326_vm4, %v5530_v4 }
 0x5df   : > { %v7240_v26 = vpop.f32.mrb[0].mxu1 }
 0x5e0   : > { %v5622_v48 = vpop.f32.mrb[1].mxu1  ;;  %v5790_v5 = vmul.f32 %v7240_v26, %v9063_v10 }
 0x5e1   : > { %v5788_v42 = vmul.f32 %v9063_v10, %v5622_v48  ;;  %v7241_v44 = vpop.f32.mrb[2].mxu1 }
 0x5e2   : > { %v5625_v21 = vpop.f32.mrb[3].mxu1  ;;  %v5791_v47 = vmul.f32 %v7241_v44, %v9063_v10  ;;  %v5829_v12 = vadd.f32 %v9068_v6, %v5790_v5 }
 0x5e3   : > { %v5789_v52 = vmul.f32 %v9063_v10, %v5625_v21  ;;  %v5827_v60 = vadd.f32 %v9068_v6, %v5788_v42 }
 0x5e4   : > { %v5861_v37 = vmax.f32 %v5829_v12, 0.0  ;;  %v5830_v36 = vadd.f32 %v9068_v6, %v5791_v47 }
 0x5e5   : > { %v5859_v40 = vmax.f32 %v5827_v60, 0.0  ;;  %v5828_v0 = vadd.f32 %v9068_v6, %v5789_v52 }
 0x5e6   : > { %v5862_v39 = vmax.f32 %v5830_v36, 0.0 }
 0x5e7   : > { %5891 = vxpose.xlu0.b32.start [1/16] (narrow) %v5859_v40, 16  ;;  %v7244_v1 = vpop.f32.mrb[4].mxu1  ;;  %v5860_v59 = vmax.f32 %v5828_v0, 0.0 }
 0x5e8   : > { %v5638_v54 = vpop.f32.mrb[5].mxu1  ;;  %v5794_v14 = vmul.f32 %v7244_v1, %v9063_v10 }
 0x5e9   : > { %v7245_v58 = vpop.f32.mrb[6].mxu1  ;;  %v5792_v19 = vmul.f32 %v9063_v10, %v5638_v54 }
 0x5ea   : > { %v5641_v25 = vpop.f32.mrb[7].mxu1  ;;  %v5795_v34 = vmul.f32 %v7245_v58, %v9063_v10  ;;  %v5833_v3 = vadd.f32 %v9068_v6, %v5794_v14 }
 0x5eb   : > { %5892 = vxpose.xlu0.b32.cont [2/16] (narrow) %v5860_v59, 16  ;;  %v5793_v30 = vmul.f32 %v9063_v10, %v5641_v25  ;;  %v5831_v63 = vadd.f32 %v9068_v6, %v5792_v19 }
 0x5ec   : > { %v5865_v43 = vmax.f32 %v5833_v3, 0.0  ;;  %v5834_v27 = vadd.f32 %v9068_v6, %v5795_v34 }
 0x5ed   : > { %v5863_v28 = vmax.f32 %v5831_v63, 0.0  ;;  %v5832_v32 = vadd.f32 %v9068_v6, %v5793_v30 }
 0x5ee   : > { %v5866_v41 = vmax.f32 %v5834_v27, 0.0 }
 0x5ef   : > { %5893 = vxpose.xlu0.b32.cont [3/16] (narrow) %v5861_v37, 16  ;;  %v7248_v13 = vpop.f32.mrb[8].mxu1  ;;  %v5864_v57 = vmax.f32 %v5832_v32, 0.0 }
 0x5f0   : > { %v5654_v45 = vpop.f32.mrb[9].mxu1  ;;  %v5798_v55 = vmul.f32 %v7248_v13, %v9063_v10 }
 0x5f1   : > { %v7249_v29 = vpop.f32.mrb[10].mxu1  ;;  %v5796_v20 = vmul.f32 %v9063_v10, %v5654_v45 }
 0x5f2   : > { %v5657_v51 = vpop.f32.mrb[11].mxu1  ;;  %v5799_v50 = vmul.f32 %v7249_v29, %v9063_v10  ;;  %v5837_v23 = vadd.f32 %v9068_v6, %v5798_v55 }
 0x5f3   : > { %5894 = vxpose.xlu0.b32.cont [4/16] (narrow) %v5862_v39, 16  ;;  %v5835_v7 = vadd.f32 %v9068_v6, %v5796_v20  ;;  %v5797_v56 = vmul.f32 %v9063_v10, %v5657_v51 }
 0x5f4   : > { %v5838_v52 = vadd.f32 %v9068_v6, %v5799_v50  ;;  %v5869_v5 = vmax.f32 %v5837_v23, 0.0 }
 0x5f5   : > { %v5867_v2 = vmax.f32 %v5835_v7, 0.0  ;;  %v5836_v17 = vadd.f32 %v9068_v6, %v5797_v56 }
 0x5f6   : > { %v5870_v59 = vmax.f32 %v5838_v52, 0.0 }
 0x5f7   : > { %5895 = vxpose.xlu0.b32.cont [5/16] (narrow) %v5863_v28, 16  ;;  %v9083_v8 = vpop.f32.mrb[12].mxu1  ;;  %v5868_v26 = vmax.f32 %v5836_v17, 0.0 }
 0x5f8   : > { %v5670_v61 = vpop.f32.mrb[13].mxu1  ;;  %v5802_v51 = vmul.f32 %v9083_v8, %v9063_v10 }
 0x5f9   : > { %v9086_v49 = vpop.f32.mrb[14].mxu1  ;;  %v5800_v21 = vmul.f32 %v9063_v10, %v5670_v61 }
 0x5fa   : > { %v5673_v9 = vpop.f32.mrb[15].mxu1  ;;  %v5803_v20 = vmul.f32 %v9086_v49, %v9063_v10 }
 0x5fb   : > { %5896 = vxpose.xlu0.b32.cont [6/16] (narrow) %v5864_v57, 16  ;;  %v5801_v54 = vmul.f32 %v9063_v10, %v5673_v9  ;;  %v5839_v12 = vadd.f32 %v9068_v6, %v5800_v21 }
 0x5fd   : > { %v5871_v14 = vmax.f32 %v5839_v12, 0.0  ;;  %v5840_v28 = vadd.f32 %v9068_v6, %v5801_v54 }
 0x5ff   : > { %5897 = vxpose.xlu0.b32.cont [7/16] (narrow) %v5865_v43, 16  ;;  %v7256_v33 = vpop.f32.mrb[16].mxu1  ;;  %v5872_v27 = vmax.f32 %v5840_v28, 0.0 }
 0x600   : > { %v5686_v53 = vpop.f32.mrb[17].mxu1  ;;  %v5806_v11 = vmul.f32 %v7256_v33, %v9063_v10  ;;  %v5841_v33 = vadd.f32 %v9068_v6, %v5802_v51 }
 0x601   : > { %v5804_v62 = vmul.f32 %v9063_v10, %v5686_v53  ;;  %v7257_v22 = vpop.f32.mrb[18].mxu1 }
 0x602   : > { %v5689_v46 = vpop.f32.mrb[19].mxu1  ;;  %v5807_v38 = vmul.f32 %v7257_v22, %v9063_v10  ;;  %v5845_v42 = vadd.f32 %v9068_v6, %v5806_v11  ;;  %v5873_v55 = vmax.f32 %v5841_v33, 0.0 }
 0x603   : > { %v5805_v15 = vmul.f32 %v9063_v10, %v5689_v46  ;;  %5898 = vxpose.xlu0.b32.cont [8/16] (narrow) %v5866_v41, 16  ;;  %v5843_v18 = vadd.f32 %v9068_v6, %v5804_v62 }
 0x604   : > { %v5877_v40 = vmax.f32 %v5845_v42, 0.0  ;;  %v5846_v0 = vadd.f32 %v9068_v6, %v5807_v38 }
 0x605   : > { %v5875_v16 = vmax.f32 %v5843_v18, 0.0  ;;  %v5844_v31 = vadd.f32 %v9068_v6, %v5805_v15 }
 0x606   : > { %v5878_v36 = vmax.f32 %v5846_v0, 0.0 }
 0x607   : > { %5899 = vxpose.xlu0.b32.cont [9/16] (narrow) %v5867_v2, 16  ;;  %5923 = vxpose.xlu1.b32.start [1/16] (narrow) %v5875_v16, 16  ;;  %v7260_v35 = vpop.f32.mrb[20].mxu1  ;;  %v5876_v48 = vmax.f32 %v5844_v31, 0.0  ;;  %v5842_v16 = vadd.f32 %v9068_v6, %v5803_v20 }
 0x608   : > { %v5702_v24 = vpop.f32.mrb[21].mxu1  ;;  %v5810_v61 = vmul.f32 %v7260_v35, %v9063_v10 }
 0x609   : > { %v7261_v4 = vpop.f32.mrb[22].mxu1  ;;  %v5808_v60 = vmul.f32 %v9063_v10, %v5702_v24  ;;  %v5874_v35 = vmax.f32 %v5842_v16, 0.0 }
 0x60a   : > { %v5705_v44 = vpop.f32.mrb[23].mxu1  ;;  %v5811_v53 = vmul.f32 %v7261_v4, %v9063_v10  ;;  %v5849_v22 = vadd.f32 %v9068_v6, %v5810_v61 }
 0x60b   : > { %5900 = vxpose.xlu0.b32.cont [10/16] (narrow) %v5868_v26, 16  ;;  %5924 = vxpose.xlu1.b32.cont [2/16] (narrow) %v5876_v48, 16  ;;  %v5809_v25 = vmul.f32 %v9063_v10, %v5705_v44  ;;  %v5847_v13 = vadd.f32 %v9068_v6, %v5808_v60 }
 0x60c   : > { %v5881_v11 = vmax.f32 %v5849_v22, 0.0  ;;  %v5850_v17 = vadd.f32 %v9068_v6, %v5811_v53 }
 0x60d   : > { %v5879_v34 = vmax.f32 %v5847_v13, 0.0  ;;  %v5848_v57 = vadd.f32 %v9068_v6, %v5809_v25 }
 0x60e   : > { %v5882_v50 = vmax.f32 %v5850_v17, 0.0 }
 0x60f   : > { %5901 = vxpose.xlu0.b32.cont [11/16] (narrow) %v5869_v5, 16  ;;  %5925 = vxpose.xlu1.b32.cont [3/16] (narrow) %v5877_v40, 16  ;;  %v7264_v1 = vpop.f32.mrb[24].mxu1  ;;  %v5880_v62 = vmax.f32 %v5848_v57, 0.0 }
 0x610   : > { %v5814_v47 = vmul.f32 %v7264_v1, %v9063_v10  ;;  %v5718_v58 = vpop.f32.mrb[25].mxu1 }
 0x611   : > { %v5812_v19 = vmul.f32 %v9063_v10, %v5718_v58  ;;  %v7265_v37 = vpop.f32.mrb[26].mxu1 }
 0x612   : > { %v5815_v45 = vmul.f32 %v7265_v37, %v9063_v10  ;;  %v5721_v30 = vpop.f32.mrb[27].mxu1  ;;  %v5853_v29 = vadd.f32 %v9068_v6, %v5814_v47 }
 0x613   : > { %v5813_v39 = vmul.f32 %v9063_v10, %v5721_v30  ;;  %5902 = vxpose.xlu0.b32.cont [12/16] (narrow) %v5870_v59, 16  ;;  %5926 = vxpose.xlu1.b32.cont [4/16] (narrow) %v5878_v36, 16  ;;  %v5851_v63 = vadd.f32 %v9068_v6, %v5812_v19 }
 0x614   : > { %v5854_v32 = vadd.f32 %v9068_v6, %v5815_v45  ;;  %v5885_v23 = vmax.f32 %v5853_v29, 0.0 }
 0x615   : > { %v5852_v3 = vadd.f32 %v9068_v6, %v5813_v39 }
 0x616   : > { %v5886_v38 = vmax.f32 %v5854_v32, 0.0 }
 0x617   : > { %5903 = vxpose.xlu0.b32.cont [13/16] (narrow) %v5871_v14, 16  ;;  %5927 = vxpose.xlu1.b32.cont [5/16] (narrow) %v5879_v34, 16  ;;  %v7268_v9 = vpop.f32.mrb[28].mxu1  ;;  %v5884_v24 = vmax.f32 %v5852_v3, 0.0 }
 0x618   : > { %v5818_v8 = vmul.f32 %v7268_v9, %v9063_v10  ;;  %v5734_v43 = vpop.f32.mrb[29].mxu1 }
 0x619   : > { %v5816_v7 = vmul.f32 %v9063_v10, %v5734_v43  ;;  %v7269_v56 = vpop.f32.mrb[30].mxu1 }
 0x61a   : > { %v5819_v41 = vmul.f32 %v7269_v56, %v9063_v10  ;;  %v5737_v46 = vpop.f32.mrb[31].mxu1  ;;  %v5857_v15 = vadd.f32 %v9068_v6, %v5818_v8 }
 0x61b   : > { %v5817_v49 = vmul.f32 %v9063_v10, %v5737_v46  ;;  %5904 = vxpose.xlu0.b32.cont [14/16] (narrow) %v5872_v27, 16  ;;  %5928 = vxpose.xlu1.b32.cont [6/16] (narrow) %v5880_v62, 16  ;;  %v5855_v18 = vadd.f32 %v9068_v6, %v5816_v7  ;;  %v5883_v10 = vmax.f32 %v5851_v63, 0.0 }
 0x61c   : > { %v5858_v2 = vadd.f32 %v9068_v6, %v5819_v41 }
 0x61d   : > { %v5856_v31 = vadd.f32 %v9068_v6, %v5817_v49  ;;  %v5887_v4 = vmax.f32 %v5855_v18, 0.0  ;;  %v5889_v6 = vmax.f32 %v5857_v15, 0.0 }
 0x61e   : > { %v5890_v48 = vmax.f32 %v5858_v2, 0.0 }
 0x61f   : > { %5905 = vxpose.xlu0.b32.cont [15/16] (narrow) %v5873_v55, 16  ;;  %5929 = vxpose.xlu1.b32.cont [7/16] (narrow) %v5881_v11, 16  ;;  %v5888_v26 = vmax.f32 %v5856_v31, 0.0 }
 0x623   : > { %5906 = vxpose.xlu0.b32.end [16/16] (narrow) %v5874_v35, 16  ;;  %5930 = vxpose.xlu1.b32.cont [8/16] (narrow) %v5882_v50, 16 }
 0x627   : > { %5931 = vxpose.xlu1.b32.cont [9/16] (narrow) %v5883_v10, 16 }
 0x62b   : > { %5932 = vxpose.xlu1.b32.cont [10/16] (narrow) %v5884_v24, 16 }
 0x62f   : > { %5933 = vxpose.xlu1.b32.cont [11/16] (narrow) %v5885_v23, 16 }
 0x633   : > { %5934 = vxpose.xlu1.b32.cont [12/16] (narrow) %v5886_v38, 16 }
 0x637   : > { %5935 = vxpose.xlu1.b32.cont [13/16] (narrow) %v5887_v4, 16 }
 0x63b   : > { %5936 = vxpose.xlu1.b32.cont [14/16] (narrow) %v5888_v26, 16 }
 0x63f   : > { %5937 = vxpose.xlu1.b32.cont [15/16] (narrow) %v5889_v6, 16 }
 0x643   : > { %5938 = vxpose.xlu1.b32.end [16/16] (narrow) %v5890_v48, 16 }
 0x667   : > { %v5907_v42 = vpop.trf.xlu0 }
 0x668   : > { %5955 = vst [vmem:[%s278_s13] sm:$0xff] %v5907_v42 }
 0x66b   : > { %v5908_v44 = vpop.trf.xlu0 }
 0x66c   : > { %5957 = vst [vmem:[%s278_s13 + $0x10] sm:$0xff] %v5908_v44 }
 0x687   : > { %v5939_v21 = vpop.trf.xlu1 }
 0x688   : > { %5956 = vst [vmem:[%s278_s13 + $0x8] sm:$0xff] %v5939_v21 }
 0x68b   : > { %v5940_v52 = vpop.trf.xlu1 }
 0x68c   : > { %5958 = vst [vmem:[%s278_s13 + $0x18] sm:$0xff] %v5940_v52 }
 0x68d PF: > { %s17_s24 = sadd.s32 1, %s7815_s24  }
 0x68e   : > { %p14_p4 = scmp.ge.s32.totalorder %s17_s24, 4  }
 0x690   :  { %16 = sbr.rel (!%p14_p4) target bundleno = 1 (0x1), region = 100 }

</bundles_post_ra>
